<compile_context>
chip_gen: v7x
topology: tpu7x:2x2x1
jax: 0.10.0
libtpu: 0.0.40
codegen_flags: <defaults>
</compile_context>

<pallas_src>
import functools
import itertools

import numpy as np
import jax
import jax.numpy as jnp
from jax.experimental import pallas as pl
from jax.experimental.pallas import tpu as pltpu

KW = 4          # conv kernel size
STRIDE = 2
PAD = 1
SLOPE = 0.2     # LeakyReLU negative slope
BN_EPS = 1e-5


# ----------------------------------------------------------------------------
# Single fused Pallas kernel: conv stack + flatten + FC head
# ----------------------------------------------------------------------------
def _discriminator_kernel(*refs, n_conv: int):
    """refs = [p1, w1, b1,
               (sel_l, w_l, b_l) for conv layers 2..n_conv,
               sel_f, w_fc1, b_fc1, w_fc2_row, b_fc2,
               out_ref]"""
    o_ref = refs[-1]

    def lrelu(v):
        return jnp.where(v >= 0.0, v, SLOPE * v)

    # ---- conv layer 1: patches precomputed by the wrapper -> one GEMM ------
    p1_ref, w1_ref, b1_ref = refs[0], refs[1], refs[2]
    acc = jnp.dot(p1_ref[...], w1_ref[...], preferred_element_type=jnp.float32)
    act = lrelu(acc + b1_ref[...]).astype(jnp.bfloat16)        # (N*H1*W1, C1)

    # ---- conv layers 2..n: in-kernel im2col (0/1 selection matmul) ---------
    pos = 3
    for _ in range(n_conv - 1):
        s_ref, w_ref, b_ref = refs[pos], refs[pos + 1], refs[pos + 2]
        pos += 3
        taps, _, cout = w_ref.shape
        m_out = s_ref.shape[0] // taps
        # gather the 16 shifted copies of the activation with one matmul;
        # values are exact (each output row has a single 0/1 source).
        patches = jnp.dot(s_ref[...], act,
                          preferred_element_type=jnp.float32).astype(jnp.bfloat16)
        acc = jnp.zeros((m_out, cout), jnp.float32)
        for t in range(taps):                      # accumulate per-tap GEMMs
            acc = acc + jnp.dot(patches[t * m_out:(t + 1) * m_out, :],
                                w_ref[t], preferred_element_type=jnp.float32)
        act = lrelu(acc + b_ref[...]).astype(jnp.bfloat16)     # (N*Hl*Wl, Cl)

    # ---- flatten (torch .view order folded into fc1 weights) + fc1 ---------
    sf_ref, wf1_ref, bf1_ref, wf2_ref, bf2_ref = refs[pos:pos + 5]
    npos, batch, _ = sf_ref.shape
    hidden = wf1_ref.shape[-1]
    acc = jnp.zeros((batch, hidden), jnp.float32)
    for s in range(npos):
        rows = jnp.dot(sf_ref[s], act,
                       preferred_element_type=jnp.float32).astype(jnp.bfloat16)
        acc = acc + jnp.dot(rows, wf1_ref[s], preferred_element_type=jnp.float32)
    h1 = lrelu(acc + bf1_ref[...])                 # keep the epilogue in f32

    # ---- fc2 (128 -> 1) as an in-kernel lane reduction ---------------------
    out = jnp.sum(h1 * wf2_ref[...], axis=1, keepdims=True) + bf2_ref[...]
    o_ref[...] = out.astype(o_ref.dtype)


# ----------------------------------------------------------------------------
# Wrapper-side glue (layout only)
# ----------------------------------------------------------------------------
def _full_block_spec(arr):
    nd = arr.ndim
    return pl.BlockSpec(arr.shape, lambda i, _nd=nd: (0,) * _nd)


def _im2col_first_layer(x_nhwc):
    """im2col for the first conv only (its input already lives in HBM)."""
    x = jnp.pad(x_nhwc, ((0, 0), (PAD, PAD), (PAD, PAD), (0, 0)))
    n, h, w, c = x.shape
    hout = (h - KW) // STRIDE + 1
    wout = (w - KW) // STRIDE + 1
    cols = []
    for i in range(KW):
        for j in range(KW):
            cols.append(x[:, i:i + STRIDE * hout:STRIDE,
                          j:j + STRIDE * wout:STRIDE, :])
    patches = jnp.stack(cols, axis=3).reshape(n * hout * wout, KW * KW * c)
    return patches, hout, wout


def _conv_selection(batch, hin, win):
    """0/1 matrix: row (t*Mout + p_out) selects the input row feeding tap t of
    output position p_out of a stride-2, pad-1, 4x4 conv (all-zero row = pad)."""
    hout, wout = hin // STRIDE, win // STRIDE
    m_in, m_out = batch * hin * win, batch * hout * wout
    sel = np.zeros((KW * KW * m_out, m_in), np.float32)
    for t, (i, j) in enumerate(itertools.product(range(KW), range(KW))):
        for n in range(batch):
            for oh in range(hout):
                ih = STRIDE * oh - PAD + i
                if not 0 <= ih < hin:
                    continue
                for ow in range(wout):
                    iw = STRIDE * ow - PAD + j
                    if not 0 <= iw < win:
                        continue
                    sel[t * m_out + n * hout * wout + oh * wout + ow,
                        n * hin * win + ih * win + iw] = 1.0
    return sel


def _flatten_selection(batch, hw):
    """q[s, n, :] selects activation row (n, spatial position s)."""
    q = np.zeros((hw, batch, batch * hw), np.float32)
    for s in range(hw):
        for n in range(batch):
            q[s, n, n * hw + s] = 1.0
    return q


# ----------------------------------------------------------------------------
# Parameters (raw torch-layout) + init-time folding for the kernel
# ----------------------------------------------------------------------------
def init_params(key, in_channels, input_size, n_layers=3, ndf=8):
    chans = [in_channels, ndf]
    nf_mult = 1
    for n in range(1, n_layers):
        nf_mult = min(2 ** n, 8)
        chans.append(ndf * nf_mult)

    keys = jax.random.split(key, n_layers + 5)
    convs = []
    for li in range(n_layers):
        cin, cout = chans[li], chans[li + 1]
        w = jax.random.normal(keys[li], (cout, cin, KW, KW), jnp.float32) * 0.05
        if li == 0:
            # first conv keeps its bias; no norm layer
            b = jax.random.normal(keys[n_layers], (cout,), jnp.float32) * 0.05
            scale = jnp.ones((cout,), jnp.float32)
            shift = jnp.zeros((cout,), jnp.float32)
        else:
            # BatchNorm2d => use_bias=False; eval-mode BN with default stats
            b = jnp.zeros((cout,), jnp.float32)
            gamma = jnp.ones((cout,), jnp.float32)
            beta = jnp.zeros((cout,), jnp.float32)
            running_mean = jnp.zeros((cout,), jnp.float32)
            running_var = jnp.ones((cout,), jnp.float32)
            scale = gamma / jnp.sqrt(running_var + BN_EPS)
            shift = beta - running_mean * scale
        convs.append(dict(w=w, b=b, scale=scale, shift=shift))

    spatial = input_size[0] * input_size[1] // (2 ** (2 * n_layers))
    fc_in = ndf * nf_mult * spatial
    fc1_w = jax.random.normal(keys[n_layers + 1], (fc_in, 128), jnp.float32) * 0.05
    fc1_b = jax.random.normal(keys[n_layers + 2], (128,), jnp.float32) * 0.05
    fc2_w = jax.random.normal(keys[n_layers + 3], (128, 1), jnp.float32) * 0.05
    fc2_b = jax.random.normal(keys[n_layers + 4], (1,), jnp.float32) * 0.05
    return dict(convs=convs, fc1_w=fc1_w, fc1_b=fc1_b, fc2_w=fc2_w, fc2_b=fc2_b)


def prepare_params(raw):
    """Fold BN + bias into the weights and reshape everything for the kernel."""
    convs = []
    for li, layer in enumerate(raw["convs"]):
        w, b, scale, shift = layer["w"], layer["b"], layer["scale"], layer["shift"]
        cout, cin = w.shape[0], w.shape[1]
        # OIHW -> (tap, cin, cout); fold the BN affine into the weights.
        w_taps = jnp.transpose(w, (2, 3, 1, 0)).reshape(KW * KW, cin, cout)
        w_taps = w_taps * scale[None, None, :]
        b_fold = (b * scale + shift).reshape(1, cout).astype(jnp.float32)
        if li == 0:
            w_out = w_taps.reshape(KW * KW * cin, cout).astype(jnp.bfloat16)
        else:
            w_out = w_taps.astype(jnp.bfloat16)
        convs.append(dict(w=w_out, b=b_fold))

    c_last = raw["convs"][-1]["w"].shape[0]
    fc_in, hidden = raw["fc1_w"].shape
    hw_last = fc_in // c_last
    # torch's .view(N, -1) flattens NCHW as (c, oh, ow); fold that permutation
    # into the fc1 weights: wf1[s, c, :] = fc1_w[c * hw + s, :]
    wf1 = jnp.transpose(raw["fc1_w"].reshape(c_last, hw_last, hidden),
                        (1, 0, 2)).astype(jnp.bfloat16)
    return dict(
        convs=convs,
        fc1_w=wf1,
        fc1_b=raw["fc1_b"].reshape(1, hidden).astype(jnp.float32),
        fc2_w_row=jnp.transpose(raw["fc2_w"]).astype(jnp.float32),  # (1, 128)
        fc2_b=raw["fc2_b"].reshape(1, 1).astype(jnp.float32),
    )


# ----------------------------------------------------------------------------
# Forward pass: one fused pallas_call
# ----------------------------------------------------------------------------
def discriminator_forward(prepared, x_nchw):
    n_conv = len(prepared["convs"])
    batch = x_nchw.shape[0]
    x = jnp.transpose(x_nchw, (0, 2, 3, 1)).astype(jnp.float32)   # NHWC, C on lanes
    patches1, hcur, wcur = _im2col_first_layer(x)
    patches1 = patches1.astype(jnp.bfloat16)

    conv0 = prepared["convs"][0]
    inputs = [patches1, conv0["w"], conv0["b"]]
    for layer in prepared["convs"][1:]:
        sel = jnp.asarray(_conv_selection(batch, hcur, wcur), jnp.bfloat16)
        inputs += [sel, layer["w"], layer["b"]]
        hcur, wcur = hcur // STRIDE, wcur // STRIDE
    hw_last = hcur * wcur
    sel_f = jnp.asarray(_flatten_selection(batch, hw_last), jnp.bfloat16)
    inputs += [sel_f, prepared["fc1_w"], prepared["fc1_b"],
               prepared["fc2_w_row"], prepared["fc2_b"]]

    kernel = functools.partial(_discriminator_kernel, n_conv=n_conv)
    out = pl.pallas_call(
        kernel,
        out_shape=jax.ShapeDtypeStruct((batch, 1), jnp.float32),
        grid=(1,),    # whole net (<1 MiB live data) fits VMEM -> single fused step
        in_specs=[_full_block_spec(a) for a in inputs],
        out_specs=pl.BlockSpec((batch, 1), lambda i: (0, 0)),
        compiler_params=pltpu.CompilerParams(dimension_semantics=("arbitrary",)),
    )(*inputs)
    return out


# ----------------------------------------------------------------------------
# Plain-JAX (XLA) f32 reference, for a correctness cross-check only
# ----------------------------------------------------------------------------
def reference_forward(raw, x_nchw):
    x = x_nchw.astype(jnp.float32)
    for layer in raw["convs"]:
        x = jax.lax.conv_general_dilated(
            x, layer["w"], window_strides=(STRIDE, STRIDE),
            padding=((PAD, PAD), (PAD, PAD)),
            dimension_numbers=("NCHW", "OIHW", "NCHW"))
        x = x + layer["b"][None, :, None, None]
        x = (x * layer["scale"][None, :, None, None]
             + layer["shift"][None, :, None, None])
        x = jnp.where(x >= 0.0, x, SLOPE * x)
    flat = x.reshape(x.shape[0], -1)
    h = flat @ raw["fc1_w"] + raw["fc1_b"]
    h = jnp.where(h >= 0.0, h, SLOPE * h)
    return h @ raw["fc2_w"] + raw["fc2_b"]


if __name__ == "__main__":
    # config consistent with the module: in_channels=4, 16x16 images,
    # n_layers=3, ndf=8 -> conv stack 4->8->16->32 channels, 16->8->4->2 spatial
    batch, in_channels, H, W = 2, 4, 16, 16
    n_layers, ndf = 3, 8

    key = jax.random.PRNGKey(0)
    k_x, k_p = jax.random.split(key)
    x = jax.random.normal(k_x, (batch, in_channels, H, W), dtype=jnp.float32)

    raw_params = init_params(k_p, in_channels, (H, W), n_layers=n_layers, ndf=ndf)
    params = prepare_params(raw_params)

    fwd = jax.jit(discriminator_forward)
    out = jax.block_until_ready(fwd(params, x))

    assert out.shape == (batch, 1), out.shape
    assert bool(jnp.all(jnp.isfinite(out)))

    # bf16 MXU operands => loose tolerance vs the f32 XLA reference
    ref = jax.block_until_ready(reference_forward(raw_params, x))
    np.testing.assert_allclose(np.asarray(out), np.asarray(ref),
                               rtol=5e-2, atol=2e-2)
    print("KERNEL_OK")
</pallas_src>

<mosaic_0001>
module attributes {stable_mosaic.version = 11 : i64} {
  func.func @_discriminator_kernel(%arg0: i32, %arg1: memref<128x64xbf16, #tpu.memory_space<vmem>>, %arg2: memref<64x8xbf16, #tpu.memory_space<vmem>>, %arg3: memref<1x8xf32, #tpu.memory_space<vmem>>, %arg4: memref<512x128xbf16, #tpu.memory_space<vmem>>, %arg5: memref<16x8x16xbf16, #tpu.memory_space<vmem>>, %arg6: memref<1x16xf32, #tpu.memory_space<vmem>>, %arg7: memref<128x32xbf16, #tpu.memory_space<vmem>>, %arg8: memref<16x16x32xbf16, #tpu.memory_space<vmem>>, %arg9: memref<1x32xf32, #tpu.memory_space<vmem>>, %arg10: memref<4x2x8xbf16, #tpu.memory_space<vmem>>, %arg11: memref<4x32x128xbf16, #tpu.memory_space<vmem>>, %arg12: memref<1x128xf32, #tpu.memory_space<vmem>>, %arg13: memref<1x128xf32, #tpu.memory_space<vmem>>, %arg14: memref<1x1xf32, #tpu.memory_space<vmem>>, %arg15: memref<2x1xf32, #tpu.memory_space<vmem>>) attributes {dimension_semantics = [#tpu.dimension_semantics<arbitrary>], iteration_bounds = array<i64: 1>, scalar_prefetch = 0 : i64, scratch_operands = 0 : i64, tpu.core_type = #tpu.core_type<tc>, window_params = [{pipeline_mode = #tpu.pipeline_mode<synchronous>, transform_indices = @transform_0, window_bounds = array<i64: 128, 64>}, {pipeline_mode = #tpu.pipeline_mode<synchronous>, transform_indices = @transform_1, window_bounds = array<i64: 64, 8>}, {pipeline_mode = #tpu.pipeline_mode<synchronous>, transform_indices = @transform_2, window_bounds = array<i64: 1, 8>}, {pipeline_mode = #tpu.pipeline_mode<synchronous>, transform_indices = @transform_3, window_bounds = array<i64: 512, 128>}, {pipeline_mode = #tpu.pipeline_mode<synchronous>, transform_indices = @transform_4, window_bounds = array<i64: 16, 8, 16>}, {pipeline_mode = #tpu.pipeline_mode<synchronous>, transform_indices = @transform_5, window_bounds = array<i64: 1, 16>}, {pipeline_mode = #tpu.pipeline_mode<synchronous>, transform_indices = @transform_6, window_bounds = array<i64: 128, 32>}, {pipeline_mode = #tpu.pipeline_mode<synchronous>, transform_indices = @transform_7, window_bounds = array<i64: 16, 16, 32>}, {pipeline_mode = #tpu.pipeline_mode<synchronous>, transform_indices = @transform_8, window_bounds = array<i64: 1, 32>}, {pipeline_mode = #tpu.pipeline_mode<synchronous>, transform_indices = @transform_9, window_bounds = array<i64: 4, 2, 8>}, {pipeline_mode = #tpu.pipeline_mode<synchronous>, transform_indices = @transform_10, window_bounds = array<i64: 4, 32, 128>}, {pipeline_mode = #tpu.pipeline_mode<synchronous>, transform_indices = @transform_11, window_bounds = array<i64: 1, 128>}, {pipeline_mode = #tpu.pipeline_mode<synchronous>, transform_indices = @transform_12, window_bounds = array<i64: 1, 128>}, {pipeline_mode = #tpu.pipeline_mode<synchronous>, transform_indices = @transform_13, window_bounds = array<i64: 1, 1>}, {pipeline_mode = #tpu.pipeline_mode<synchronous>, transform_indices = @transform_14, window_bounds = array<i64: 2, 1>}]} {
    %c0 = arith.constant 0 : index
    %c0_0 = arith.constant 0 : index
    %0 = vector.load %arg1[%c0, %c0_0] : memref<128x64xbf16, #tpu.memory_space<vmem>>, vector<128x64xbf16>
    %c0_1 = arith.constant 0 : index
    %c0_2 = arith.constant 0 : index
    %1 = vector.load %arg2[%c0_1, %c0_2] : memref<64x8xbf16, #tpu.memory_space<vmem>>, vector<64x8xbf16>
    %cst = arith.constant dense<0.000000e+00> : vector<128x8xf32>
    %2 = tpu.matmul %0, %1, %cst {dimension_numbers = #tpu.dot_dimension_numbers<[1], [0], [0], [1], [0, 0, 1, 1], [], []>} : vector<128x64xbf16>, vector<64x8xbf16>, vector<128x8xf32> -> vector<128x8xf32>
    %c0_3 = arith.constant 0 : index
    %c0_4 = arith.constant 0 : index
    %3 = vector.load %arg3[%c0_3, %c0_4] : memref<1x8xf32, #tpu.memory_space<vmem>>, vector<1x8xf32>
    %4 = vector.broadcast %3 : vector<1x8xf32> to vector<128x8xf32>
    %5 = arith.addf %2, %4 : vector<128x8xf32>
    %cst_5 = arith.constant 0.000000e+00 : f32
    %6 = vector.broadcast %cst_5 : f32 to vector<128x8xf32>
    %7 = arith.cmpf oge, %5, %6 : vector<128x8xf32>
    %cst_6 = arith.constant 2.000000e-01 : f32
    %8 = vector.broadcast %cst_6 : f32 to vector<128x8xf32>
    %9 = arith.mulf %8, %5 : vector<128x8xf32>
    %10 = arith.select %7, %5, %9 : vector<128x8xi1>, vector<128x8xf32>
    %11 = arith.truncf %10 : vector<128x8xf32> to vector<128x8xbf16>
    %c0_7 = arith.constant 0 : index
    %c0_8 = arith.constant 0 : index
    %12 = vector.load %arg4[%c0_7, %c0_8] : memref<512x128xbf16, #tpu.memory_space<vmem>>, vector<512x128xbf16>
    %cst_9 = arith.constant dense<0.000000e+00> : vector<512x8xf32>
    %13 = tpu.matmul %12, %11, %cst_9 {dimension_numbers = #tpu.dot_dimension_numbers<[1], [0], [0], [1], [0, 0, 1, 1], [], []>} : vector<512x128xbf16>, vector<128x8xbf16>, vector<512x8xf32> -> vector<512x8xf32>
    %14 = arith.truncf %13 : vector<512x8xf32> to vector<512x8xbf16>
    %cst_10 = arith.constant 0.000000e+00 : f32
    %15 = vector.broadcast %cst_10 : f32 to vector<32x16xf32>
    %16 = vector.extract_strided_slice %14 {offsets = [0, 0], sizes = [32, 8], strides = [1, 1]} : vector<512x8xbf16> to vector<32x8xbf16>
    %c0_11 = arith.constant 0 : index
    %c0_12 = arith.constant 0 : index
    %c0_13 = arith.constant 0 : index
    %17 = vector.load %arg5[%c0_11, %c0_12, %c0_13] : memref<16x8x16xbf16, #tpu.memory_space<vmem>>, vector<1x8x16xbf16>
    %18 = vector.shape_cast %17 : vector<1x8x16xbf16> to vector<8x16xbf16>
    %cst_14 = arith.constant dense<0.000000e+00> : vector<32x16xf32>
    %19 = tpu.matmul %16, %18, %cst_14 {dimension_numbers = #tpu.dot_dimension_numbers<[1], [0], [0], [1], [0, 0, 1, 1], [], []>} : vector<32x8xbf16>, vector<8x16xbf16>, vector<32x16xf32> -> vector<32x16xf32>
    %20 = arith.addf %15, %19 : vector<32x16xf32>
    %21 = vector.extract_strided_slice %14 {offsets = [32, 0], sizes = [32, 8], strides = [1, 1]} : vector<512x8xbf16> to vector<32x8xbf16>
    %c1 = arith.constant 1 : index
    %c0_15 = arith.constant 0 : index
    %c0_16 = arith.constant 0 : index
    %22 = vector.load %arg5[%c1, %c0_15, %c0_16] : memref<16x8x16xbf16, #tpu.memory_space<vmem>>, vector<1x8x16xbf16>
    %23 = vector.shape_cast %22 : vector<1x8x16xbf16> to vector<8x16xbf16>
    %cst_17 = arith.constant dense<0.000000e+00> : vector<32x16xf32>
    %24 = tpu.matmul %21, %23, %cst_17 {dimension_numbers = #tpu.dot_dimension_numbers<[1], [0], [0], [1], [0, 0, 1, 1], [], []>} : vector<32x8xbf16>, vector<8x16xbf16>, vector<32x16xf32> -> vector<32x16xf32>
    %25 = arith.addf %20, %24 : vector<32x16xf32>
    %26 = vector.extract_strided_slice %14 {offsets = [64, 0], sizes = [32, 8], strides = [1, 1]} : vector<512x8xbf16> to vector<32x8xbf16>
    %c2 = arith.constant 2 : index
    %c0_18 = arith.constant 0 : index
    %c0_19 = arith.constant 0 : index
    %27 = vector.load %arg5[%c2, %c0_18, %c0_19] : memref<16x8x16xbf16, #tpu.memory_space<vmem>>, vector<1x8x16xbf16>
    %28 = vector.shape_cast %27 : vector<1x8x16xbf16> to vector<8x16xbf16>
    %cst_20 = arith.constant dense<0.000000e+00> : vector<32x16xf32>
    %29 = tpu.matmul %26, %28, %cst_20 {dimension_numbers = #tpu.dot_dimension_numbers<[1], [0], [0], [1], [0, 0, 1, 1], [], []>} : vector<32x8xbf16>, vector<8x16xbf16>, vector<32x16xf32> -> vector<32x16xf32>
    %30 = arith.addf %25, %29 : vector<32x16xf32>
    %31 = vector.extract_strided_slice %14 {offsets = [96, 0], sizes = [32, 8], strides = [1, 1]} : vector<512x8xbf16> to vector<32x8xbf16>
    %c3 = arith.constant 3 : index
    %c0_21 = arith.constant 0 : index
    %c0_22 = arith.constant 0 : index
    %32 = vector.load %arg5[%c3, %c0_21, %c0_22] : memref<16x8x16xbf16, #tpu.memory_space<vmem>>, vector<1x8x16xbf16>
    %33 = vector.shape_cast %32 : vector<1x8x16xbf16> to vector<8x16xbf16>
    %cst_23 = arith.constant dense<0.000000e+00> : vector<32x16xf32>
    %34 = tpu.matmul %31, %33, %cst_23 {dimension_numbers = #tpu.dot_dimension_numbers<[1], [0], [0], [1], [0, 0, 1, 1], [], []>} : vector<32x8xbf16>, vector<8x16xbf16>, vector<32x16xf32> -> vector<32x16xf32>
    %35 = arith.addf %30, %34 : vector<32x16xf32>
    %36 = vector.extract_strided_slice %14 {offsets = [128, 0], sizes = [32, 8], strides = [1, 1]} : vector<512x8xbf16> to vector<32x8xbf16>
    %c4 = arith.constant 4 : index
    %c0_24 = arith.constant 0 : index
    %c0_25 = arith.constant 0 : index
    %37 = vector.load %arg5[%c4, %c0_24, %c0_25] : memref<16x8x16xbf16, #tpu.memory_space<vmem>>, vector<1x8x16xbf16>
    %38 = vector.shape_cast %37 : vector<1x8x16xbf16> to vector<8x16xbf16>
    %cst_26 = arith.constant dense<0.000000e+00> : vector<32x16xf32>
    %39 = tpu.matmul %36, %38, %cst_26 {dimension_numbers = #tpu.dot_dimension_numbers<[1], [0], [0], [1], [0, 0, 1, 1], [], []>} : vector<32x8xbf16>, vector<8x16xbf16>, vector<32x16xf32> -> vector<32x16xf32>
    %40 = arith.addf %35, %39 : vector<32x16xf32>
    %41 = vector.extract_strided_slice %14 {offsets = [160, 0], sizes = [32, 8], strides = [1, 1]} : vector<512x8xbf16> to vector<32x8xbf16>
    %c5 = arith.constant 5 : index
    %c0_27 = arith.constant 0 : index
    %c0_28 = arith.constant 0 : index
    %42 = vector.load %arg5[%c5, %c0_27, %c0_28] : memref<16x8x16xbf16, #tpu.memory_space<vmem>>, vector<1x8x16xbf16>
    %43 = vector.shape_cast %42 : vector<1x8x16xbf16> to vector<8x16xbf16>
    %cst_29 = arith.constant dense<0.000000e+00> : vector<32x16xf32>
    %44 = tpu.matmul %41, %43, %cst_29 {dimension_numbers = #tpu.dot_dimension_numbers<[1], [0], [0], [1], [0, 0, 1, 1], [], []>} : vector<32x8xbf16>, vector<8x16xbf16>, vector<32x16xf32> -> vector<32x16xf32>
    %45 = arith.addf %40, %44 : vector<32x16xf32>
    %46 = vector.extract_strided_slice %14 {offsets = [192, 0], sizes = [32, 8], strides = [1, 1]} : vector<512x8xbf16> to vector<32x8xbf16>
    %c6 = arith.constant 6 : index
    %c0_30 = arith.constant 0 : index
    %c0_31 = arith.constant 0 : index
    %47 = vector.load %arg5[%c6, %c0_30, %c0_31] : memref<16x8x16xbf16, #tpu.memory_space<vmem>>, vector<1x8x16xbf16>
    %48 = vector.shape_cast %47 : vector<1x8x16xbf16> to vector<8x16xbf16>
    %cst_32 = arith.constant dense<0.000000e+00> : vector<32x16xf32>
    %49 = tpu.matmul %46, %48, %cst_32 {dimension_numbers = #tpu.dot_dimension_numbers<[1], [0], [0], [1], [0, 0, 1, 1], [], []>} : vector<32x8xbf16>, vector<8x16xbf16>, vector<32x16xf32> -> vector<32x16xf32>
    %50 = arith.addf %45, %49 : vector<32x16xf32>
    %51 = vector.extract_strided_slice %14 {offsets = [224, 0], sizes = [32, 8], strides = [1, 1]} : vector<512x8xbf16> to vector<32x8xbf16>
    %c7 = arith.constant 7 : index
    %c0_33 = arith.constant 0 : index
    %c0_34 = arith.constant 0 : index
    %52 = vector.load %arg5[%c7, %c0_33, %c0_34] : memref<16x8x16xbf16, #tpu.memory_space<vmem>>, vector<1x8x16xbf16>
    %53 = vector.shape_cast %52 : vector<1x8x16xbf16> to vector<8x16xbf16>
    %cst_35 = arith.constant dense<0.000000e+00> : vector<32x16xf32>
    %54 = tpu.matmul %51, %53, %cst_35 {dimension_numbers = #tpu.dot_dimension_numbers<[1], [0], [0], [1], [0, 0, 1, 1], [], []>} : vector<32x8xbf16>, vector<8x16xbf16>, vector<32x16xf32> -> vector<32x16xf32>
    %55 = arith.addf %50, %54 : vector<32x16xf32>
    %56 = vector.extract_strided_slice %14 {offsets = [256, 0], sizes = [32, 8], strides = [1, 1]} : vector<512x8xbf16> to vector<32x8xbf16>
    %c8 = arith.constant 8 : index
    %c0_36 = arith.constant 0 : index
    %c0_37 = arith.constant 0 : index
    %57 = vector.load %arg5[%c8, %c0_36, %c0_37] : memref<16x8x16xbf16, #tpu.memory_space<vmem>>, vector<1x8x16xbf16>
    %58 = vector.shape_cast %57 : vector<1x8x16xbf16> to vector<8x16xbf16>
    %cst_38 = arith.constant dense<0.000000e+00> : vector<32x16xf32>
    %59 = tpu.matmul %56, %58, %cst_38 {dimension_numbers = #tpu.dot_dimension_numbers<[1], [0], [0], [1], [0, 0, 1, 1], [], []>} : vector<32x8xbf16>, vector<8x16xbf16>, vector<32x16xf32> -> vector<32x16xf32>
    %60 = arith.addf %55, %59 : vector<32x16xf32>
    %61 = vector.extract_strided_slice %14 {offsets = [288, 0], sizes = [32, 8], strides = [1, 1]} : vector<512x8xbf16> to vector<32x8xbf16>
    %c9 = arith.constant 9 : index
    %c0_39 = arith.constant 0 : index
    %c0_40 = arith.constant 0 : index
    %62 = vector.load %arg5[%c9, %c0_39, %c0_40] : memref<16x8x16xbf16, #tpu.memory_space<vmem>>, vector<1x8x16xbf16>
    %63 = vector.shape_cast %62 : vector<1x8x16xbf16> to vector<8x16xbf16>
    %cst_41 = arith.constant dense<0.000000e+00> : vector<32x16xf32>
    %64 = tpu.matmul %61, %63, %cst_41 {dimension_numbers = #tpu.dot_dimension_numbers<[1], [0], [0], [1], [0, 0, 1, 1], [], []>} : vector<32x8xbf16>, vector<8x16xbf16>, vector<32x16xf32> -> vector<32x16xf32>
    %65 = arith.addf %60, %64 : vector<32x16xf32>
    %66 = vector.extract_strided_slice %14 {offsets = [320, 0], sizes = [32, 8], strides = [1, 1]} : vector<512x8xbf16> to vector<32x8xbf16>
    %c10 = arith.constant 10 : index
    %c0_42 = arith.constant 0 : index
    %c0_43 = arith.constant 0 : index
    %67 = vector.load %arg5[%c10, %c0_42, %c0_43] : memref<16x8x16xbf16, #tpu.memory_space<vmem>>, vector<1x8x16xbf16>
    %68 = vector.shape_cast %67 : vector<1x8x16xbf16> to vector<8x16xbf16>
    %cst_44 = arith.constant dense<0.000000e+00> : vector<32x16xf32>
    %69 = tpu.matmul %66, %68, %cst_44 {dimension_numbers = #tpu.dot_dimension_numbers<[1], [0], [0], [1], [0, 0, 1, 1], [], []>} : vector<32x8xbf16>, vector<8x16xbf16>, vector<32x16xf32> -> vector<32x16xf32>
    %70 = arith.addf %65, %69 : vector<32x16xf32>
    %71 = vector.extract_strided_slice %14 {offsets = [352, 0], sizes = [32, 8], strides = [1, 1]} : vector<512x8xbf16> to vector<32x8xbf16>
    %c11 = arith.constant 11 : index
    %c0_45 = arith.constant 0 : index
    %c0_46 = arith.constant 0 : index
    %72 = vector.load %arg5[%c11, %c0_45, %c0_46] : memref<16x8x16xbf16, #tpu.memory_space<vmem>>, vector<1x8x16xbf16>
    %73 = vector.shape_cast %72 : vector<1x8x16xbf16> to vector<8x16xbf16>
    %cst_47 = arith.constant dense<0.000000e+00> : vector<32x16xf32>
    %74 = tpu.matmul %71, %73, %cst_47 {dimension_numbers = #tpu.dot_dimension_numbers<[1], [0], [0], [1], [0, 0, 1, 1], [], []>} : vector<32x8xbf16>, vector<8x16xbf16>, vector<32x16xf32> -> vector<32x16xf32>
    %75 = arith.addf %70, %74 : vector<32x16xf32>
    %76 = vector.extract_strided_slice %14 {offsets = [384, 0], sizes = [32, 8], strides = [1, 1]} : vector<512x8xbf16> to vector<32x8xbf16>
    %c12 = arith.constant 12 : index
    %c0_48 = arith.constant 0 : index
    %c0_49 = arith.constant 0 : index
    %77 = vector.load %arg5[%c12, %c0_48, %c0_49] : memref<16x8x16xbf16, #tpu.memory_space<vmem>>, vector<1x8x16xbf16>
    %78 = vector.shape_cast %77 : vector<1x8x16xbf16> to vector<8x16xbf16>
    %cst_50 = arith.constant dense<0.000000e+00> : vector<32x16xf32>
    %79 = tpu.matmul %76, %78, %cst_50 {dimension_numbers = #tpu.dot_dimension_numbers<[1], [0], [0], [1], [0, 0, 1, 1], [], []>} : vector<32x8xbf16>, vector<8x16xbf16>, vector<32x16xf32> -> vector<32x16xf32>
    %80 = arith.addf %75, %79 : vector<32x16xf32>
    %81 = vector.extract_strided_slice %14 {offsets = [416, 0], sizes = [32, 8], strides = [1, 1]} : vector<512x8xbf16> to vector<32x8xbf16>
    %c13 = arith.constant 13 : index
    %c0_51 = arith.constant 0 : index
    %c0_52 = arith.constant 0 : index
    %82 = vector.load %arg5[%c13, %c0_51, %c0_52] : memref<16x8x16xbf16, #tpu.memory_space<vmem>>, vector<1x8x16xbf16>
    %83 = vector.shape_cast %82 : vector<1x8x16xbf16> to vector<8x16xbf16>
    %cst_53 = arith.constant dense<0.000000e+00> : vector<32x16xf32>
    %84 = tpu.matmul %81, %83, %cst_53 {dimension_numbers = #tpu.dot_dimension_numbers<[1], [0], [0], [1], [0, 0, 1, 1], [], []>} : vector<32x8xbf16>, vector<8x16xbf16>, vector<32x16xf32> -> vector<32x16xf32>
    %85 = arith.addf %80, %84 : vector<32x16xf32>
    %86 = vector.extract_strided_slice %14 {offsets = [448, 0], sizes = [32, 8], strides = [1, 1]} : vector<512x8xbf16> to vector<32x8xbf16>
    %c14 = arith.constant 14 : index
    %c0_54 = arith.constant 0 : index
    %c0_55 = arith.constant 0 : index
    %87 = vector.load %arg5[%c14, %c0_54, %c0_55] : memref<16x8x16xbf16, #tpu.memory_space<vmem>>, vector<1x8x16xbf16>
    %88 = vector.shape_cast %87 : vector<1x8x16xbf16> to vector<8x16xbf16>
    %cst_56 = arith.constant dense<0.000000e+00> : vector<32x16xf32>
    %89 = tpu.matmul %86, %88, %cst_56 {dimension_numbers = #tpu.dot_dimension_numbers<[1], [0], [0], [1], [0, 0, 1, 1], [], []>} : vector<32x8xbf16>, vector<8x16xbf16>, vector<32x16xf32> -> vector<32x16xf32>
    %90 = arith.addf %85, %89 : vector<32x16xf32>
    %91 = vector.extract_strided_slice %14 {offsets = [480, 0], sizes = [32, 8], strides = [1, 1]} : vector<512x8xbf16> to vector<32x8xbf16>
    %c15 = arith.constant 15 : index
    %c0_57 = arith.constant 0 : index
    %c0_58 = arith.constant 0 : index
    %92 = vector.load %arg5[%c15, %c0_57, %c0_58] : memref<16x8x16xbf16, #tpu.memory_space<vmem>>, vector<1x8x16xbf16>
    %93 = vector.shape_cast %92 : vector<1x8x16xbf16> to vector<8x16xbf16>
    %cst_59 = arith.constant dense<0.000000e+00> : vector<32x16xf32>
    %94 = tpu.matmul %91, %93, %cst_59 {dimension_numbers = #tpu.dot_dimension_numbers<[1], [0], [0], [1], [0, 0, 1, 1], [], []>} : vector<32x8xbf16>, vector<8x16xbf16>, vector<32x16xf32> -> vector<32x16xf32>
    %95 = arith.addf %90, %94 : vector<32x16xf32>
    %c0_60 = arith.constant 0 : index
    %c0_61 = arith.constant 0 : index
    %96 = vector.load %arg6[%c0_60, %c0_61] : memref<1x16xf32, #tpu.memory_space<vmem>>, vector<1x16xf32>
    %97 = vector.broadcast %96 : vector<1x16xf32> to vector<32x16xf32>
    %98 = arith.addf %95, %97 : vector<32x16xf32>
    %cst_62 = arith.constant 0.000000e+00 : f32
    %99 = vector.broadcast %cst_62 : f32 to vector<32x16xf32>
    %100 = arith.cmpf oge, %98, %99 : vector<32x16xf32>
    %cst_63 = arith.constant 2.000000e-01 : f32
    %101 = vector.broadcast %cst_63 : f32 to vector<32x16xf32>
    %102 = arith.mulf %101, %98 : vector<32x16xf32>
    %103 = arith.select %100, %98, %102 : vector<32x16xi1>, vector<32x16xf32>
    %104 = arith.truncf %103 : vector<32x16xf32> to vector<32x16xbf16>
    %c0_64 = arith.constant 0 : index
    %c0_65 = arith.constant 0 : index
    %105 = vector.load %arg7[%c0_64, %c0_65] : memref<128x32xbf16, #tpu.memory_space<vmem>>, vector<128x32xbf16>
    %cst_66 = arith.constant dense<0.000000e+00> : vector<128x16xf32>
    %106 = tpu.matmul %105, %104, %cst_66 {dimension_numbers = #tpu.dot_dimension_numbers<[1], [0], [0], [1], [0, 0, 1, 1], [], []>} : vector<128x32xbf16>, vector<32x16xbf16>, vector<128x16xf32> -> vector<128x16xf32>
    %107 = arith.truncf %106 : vector<128x16xf32> to vector<128x16xbf16>
    %cst_67 = arith.constant 0.000000e+00 : f32
    %108 = vector.broadcast %cst_67 : f32 to vector<8x32xf32>
    %109 = vector.extract_strided_slice %107 {offsets = [0, 0], sizes = [8, 16], strides = [1, 1]} : vector<128x16xbf16> to vector<8x16xbf16>
    %c0_68 = arith.constant 0 : index
    %c0_69 = arith.constant 0 : index
    %c0_70 = arith.constant 0 : index
    %110 = vector.load %arg8[%c0_68, %c0_69, %c0_70] : memref<16x16x32xbf16, #tpu.memory_space<vmem>>, vector<1x16x32xbf16>
    %111 = vector.shape_cast %110 : vector<1x16x32xbf16> to vector<16x32xbf16>
    %cst_71 = arith.constant dense<0.000000e+00> : vector<8x32xf32>
    %112 = tpu.matmul %109, %111, %cst_71 {dimension_numbers = #tpu.dot_dimension_numbers<[1], [0], [0], [1], [0, 0, 1, 1], [], []>} : vector<8x16xbf16>, vector<16x32xbf16>, vector<8x32xf32> -> vector<8x32xf32>
    %113 = arith.addf %108, %112 : vector<8x32xf32>
    %114 = vector.extract_strided_slice %107 {offsets = [8, 0], sizes = [8, 16], strides = [1, 1]} : vector<128x16xbf16> to vector<8x16xbf16>
    %c1_72 = arith.constant 1 : index
    %c0_73 = arith.constant 0 : index
    %c0_74 = arith.constant 0 : index
    %115 = vector.load %arg8[%c1_72, %c0_73, %c0_74] : memref<16x16x32xbf16, #tpu.memory_space<vmem>>, vector<1x16x32xbf16>
    %116 = vector.shape_cast %115 : vector<1x16x32xbf16> to vector<16x32xbf16>
    %cst_75 = arith.constant dense<0.000000e+00> : vector<8x32xf32>
    %117 = tpu.matmul %114, %116, %cst_75 {dimension_numbers = #tpu.dot_dimension_numbers<[1], [0], [0], [1], [0, 0, 1, 1], [], []>} : vector<8x16xbf16>, vector<16x32xbf16>, vector<8x32xf32> -> vector<8x32xf32>
    %118 = arith.addf %113, %117 : vector<8x32xf32>
    %119 = vector.extract_strided_slice %107 {offsets = [16, 0], sizes = [8, 16], strides = [1, 1]} : vector<128x16xbf16> to vector<8x16xbf16>
    %c2_76 = arith.constant 2 : index
    %c0_77 = arith.constant 0 : index
    %c0_78 = arith.constant 0 : index
    %120 = vector.load %arg8[%c2_76, %c0_77, %c0_78] : memref<16x16x32xbf16, #tpu.memory_space<vmem>>, vector<1x16x32xbf16>
    %121 = vector.shape_cast %120 : vector<1x16x32xbf16> to vector<16x32xbf16>
    %cst_79 = arith.constant dense<0.000000e+00> : vector<8x32xf32>
    %122 = tpu.matmul %119, %121, %cst_79 {dimension_numbers = #tpu.dot_dimension_numbers<[1], [0], [0], [1], [0, 0, 1, 1], [], []>} : vector<8x16xbf16>, vector<16x32xbf16>, vector<8x32xf32> -> vector<8x32xf32>
    %123 = arith.addf %118, %122 : vector<8x32xf32>
    %124 = vector.extract_strided_slice %107 {offsets = [24, 0], sizes = [8, 16], strides = [1, 1]} : vector<128x16xbf16> to vector<8x16xbf16>
    %c3_80 = arith.constant 3 : index
    %c0_81 = arith.constant 0 : index
    %c0_82 = arith.constant 0 : index
    %125 = vector.load %arg8[%c3_80, %c0_81, %c0_82] : memref<16x16x32xbf16, #tpu.memory_space<vmem>>, vector<1x16x32xbf16>
    %126 = vector.shape_cast %125 : vector<1x16x32xbf16> to vector<16x32xbf16>
    %cst_83 = arith.constant dense<0.000000e+00> : vector<8x32xf32>
    %127 = tpu.matmul %124, %126, %cst_83 {dimension_numbers = #tpu.dot_dimension_numbers<[1], [0], [0], [1], [0, 0, 1, 1], [], []>} : vector<8x16xbf16>, vector<16x32xbf16>, vector<8x32xf32> -> vector<8x32xf32>
    %128 = arith.addf %123, %127 : vector<8x32xf32>
    %129 = vector.extract_strided_slice %107 {offsets = [32, 0], sizes = [8, 16], strides = [1, 1]} : vector<128x16xbf16> to vector<8x16xbf16>
    %c4_84 = arith.constant 4 : index
    %c0_85 = arith.constant 0 : index
    %c0_86 = arith.constant 0 : index
    %130 = vector.load %arg8[%c4_84, %c0_85, %c0_86] : memref<16x16x32xbf16, #tpu.memory_space<vmem>>, vector<1x16x32xbf16>
    %131 = vector.shape_cast %130 : vector<1x16x32xbf16> to vector<16x32xbf16>
    %cst_87 = arith.constant dense<0.000000e+00> : vector<8x32xf32>
    %132 = tpu.matmul %129, %131, %cst_87 {dimension_numbers = #tpu.dot_dimension_numbers<[1], [0], [0], [1], [0, 0, 1, 1], [], []>} : vector<8x16xbf16>, vector<16x32xbf16>, vector<8x32xf32> -> vector<8x32xf32>
    %133 = arith.addf %128, %132 : vector<8x32xf32>
    %134 = vector.extract_strided_slice %107 {offsets = [40, 0], sizes = [8, 16], strides = [1, 1]} : vector<128x16xbf16> to vector<8x16xbf16>
    %c5_88 = arith.constant 5 : index
    %c0_89 = arith.constant 0 : index
    %c0_90 = arith.constant 0 : index
    %135 = vector.load %arg8[%c5_88, %c0_89, %c0_90] : memref<16x16x32xbf16, #tpu.memory_space<vmem>>, vector<1x16x32xbf16>
    %136 = vector.shape_cast %135 : vector<1x16x32xbf16> to vector<16x32xbf16>
    %cst_91 = arith.constant dense<0.000000e+00> : vector<8x32xf32>
    %137 = tpu.matmul %134, %136, %cst_91 {dimension_numbers = #tpu.dot_dimension_numbers<[1], [0], [0], [1], [0, 0, 1, 1], [], []>} : vector<8x16xbf16>, vector<16x32xbf16>, vector<8x32xf32> -> vector<8x32xf32>
    %138 = arith.addf %133, %137 : vector<8x32xf32>
    %139 = vector.extract_strided_slice %107 {offsets = [48, 0], sizes = [8, 16], strides = [1, 1]} : vector<128x16xbf16> to vector<8x16xbf16>
    %c6_92 = arith.constant 6 : index
    %c0_93 = arith.constant 0 : index
    %c0_94 = arith.constant 0 : index
    %140 = vector.load %arg8[%c6_92, %c0_93, %c0_94] : memref<16x16x32xbf16, #tpu.memory_space<vmem>>, vector<1x16x32xbf16>
    %141 = vector.shape_cast %140 : vector<1x16x32xbf16> to vector<16x32xbf16>
    %cst_95 = arith.constant dense<0.000000e+00> : vector<8x32xf32>
    %142 = tpu.matmul %139, %141, %cst_95 {dimension_numbers = #tpu.dot_dimension_numbers<[1], [0], [0], [1], [0, 0, 1, 1], [], []>} : vector<8x16xbf16>, vector<16x32xbf16>, vector<8x32xf32> -> vector<8x32xf32>
    %143 = arith.addf %138, %142 : vector<8x32xf32>
    %144 = vector.extract_strided_slice %107 {offsets = [56, 0], sizes = [8, 16], strides = [1, 1]} : vector<128x16xbf16> to vector<8x16xbf16>
    %c7_96 = arith.constant 7 : index
    %c0_97 = arith.constant 0 : index
    %c0_98 = arith.constant 0 : index
    %145 = vector.load %arg8[%c7_96, %c0_97, %c0_98] : memref<16x16x32xbf16, #tpu.memory_space<vmem>>, vector<1x16x32xbf16>
    %146 = vector.shape_cast %145 : vector<1x16x32xbf16> to vector<16x32xbf16>
    %cst_99 = arith.constant dense<0.000000e+00> : vector<8x32xf32>
    %147 = tpu.matmul %144, %146, %cst_99 {dimension_numbers = #tpu.dot_dimension_numbers<[1], [0], [0], [1], [0, 0, 1, 1], [], []>} : vector<8x16xbf16>, vector<16x32xbf16>, vector<8x32xf32> -> vector<8x32xf32>
    %148 = arith.addf %143, %147 : vector<8x32xf32>
    %149 = vector.extract_strided_slice %107 {offsets = [64, 0], sizes = [8, 16], strides = [1, 1]} : vector<128x16xbf16> to vector<8x16xbf16>
    %c8_100 = arith.constant 8 : index
    %c0_101 = arith.constant 0 : index
    %c0_102 = arith.constant 0 : index
    %150 = vector.load %arg8[%c8_100, %c0_101, %c0_102] : memref<16x16x32xbf16, #tpu.memory_space<vmem>>, vector<1x16x32xbf16>
    %151 = vector.shape_cast %150 : vector<1x16x32xbf16> to vector<16x32xbf16>
    %cst_103 = arith.constant dense<0.000000e+00> : vector<8x32xf32>
    %152 = tpu.matmul %149, %151, %cst_103 {dimension_numbers = #tpu.dot_dimension_numbers<[1], [0], [0], [1], [0, 0, 1, 1], [], []>} : vector<8x16xbf16>, vector<16x32xbf16>, vector<8x32xf32> -> vector<8x32xf32>
    %153 = arith.addf %148, %152 : vector<8x32xf32>
    %154 = vector.extract_strided_slice %107 {offsets = [72, 0], sizes = [8, 16], strides = [1, 1]} : vector<128x16xbf16> to vector<8x16xbf16>
    %c9_104 = arith.constant 9 : index
    %c0_105 = arith.constant 0 : index
    %c0_106 = arith.constant 0 : index
    %155 = vector.load %arg8[%c9_104, %c0_105, %c0_106] : memref<16x16x32xbf16, #tpu.memory_space<vmem>>, vector<1x16x32xbf16>
    %156 = vector.shape_cast %155 : vector<1x16x32xbf16> to vector<16x32xbf16>
    %cst_107 = arith.constant dense<0.000000e+00> : vector<8x32xf32>
    %157 = tpu.matmul %154, %156, %cst_107 {dimension_numbers = #tpu.dot_dimension_numbers<[1], [0], [0], [1], [0, 0, 1, 1], [], []>} : vector<8x16xbf16>, vector<16x32xbf16>, vector<8x32xf32> -> vector<8x32xf32>
    %158 = arith.addf %153, %157 : vector<8x32xf32>
    %159 = vector.extract_strided_slice %107 {offsets = [80, 0], sizes = [8, 16], strides = [1, 1]} : vector<128x16xbf16> to vector<8x16xbf16>
    %c10_108 = arith.constant 10 : index
    %c0_109 = arith.constant 0 : index
    %c0_110 = arith.constant 0 : index
    %160 = vector.load %arg8[%c10_108, %c0_109, %c0_110] : memref<16x16x32xbf16, #tpu.memory_space<vmem>>, vector<1x16x32xbf16>
    %161 = vector.shape_cast %160 : vector<1x16x32xbf16> to vector<16x32xbf16>
    %cst_111 = arith.constant dense<0.000000e+00> : vector<8x32xf32>
    %162 = tpu.matmul %159, %161, %cst_111 {dimension_numbers = #tpu.dot_dimension_numbers<[1], [0], [0], [1], [0, 0, 1, 1], [], []>} : vector<8x16xbf16>, vector<16x32xbf16>, vector<8x32xf32> -> vector<8x32xf32>
    %163 = arith.addf %158, %162 : vector<8x32xf32>
    %164 = vector.extract_strided_slice %107 {offsets = [88, 0], sizes = [8, 16], strides = [1, 1]} : vector<128x16xbf16> to vector<8x16xbf16>
    %c11_112 = arith.constant 11 : index
    %c0_113 = arith.constant 0 : index
    %c0_114 = arith.constant 0 : index
    %165 = vector.load %arg8[%c11_112, %c0_113, %c0_114] : memref<16x16x32xbf16, #tpu.memory_space<vmem>>, vector<1x16x32xbf16>
    %166 = vector.shape_cast %165 : vector<1x16x32xbf16> to vector<16x32xbf16>
    %cst_115 = arith.constant dense<0.000000e+00> : vector<8x32xf32>
    %167 = tpu.matmul %164, %166, %cst_115 {dimension_numbers = #tpu.dot_dimension_numbers<[1], [0], [0], [1], [0, 0, 1, 1], [], []>} : vector<8x16xbf16>, vector<16x32xbf16>, vector<8x32xf32> -> vector<8x32xf32>
    %168 = arith.addf %163, %167 : vector<8x32xf32>
    %169 = vector.extract_strided_slice %107 {offsets = [96, 0], sizes = [8, 16], strides = [1, 1]} : vector<128x16xbf16> to vector<8x16xbf16>
    %c12_116 = arith.constant 12 : index
    %c0_117 = arith.constant 0 : index
    %c0_118 = arith.constant 0 : index
    %170 = vector.load %arg8[%c12_116, %c0_117, %c0_118] : memref<16x16x32xbf16, #tpu.memory_space<vmem>>, vector<1x16x32xbf16>
    %171 = vector.shape_cast %170 : vector<1x16x32xbf16> to vector<16x32xbf16>
    %cst_119 = arith.constant dense<0.000000e+00> : vector<8x32xf32>
    %172 = tpu.matmul %169, %171, %cst_119 {dimension_numbers = #tpu.dot_dimension_numbers<[1], [0], [0], [1], [0, 0, 1, 1], [], []>} : vector<8x16xbf16>, vector<16x32xbf16>, vector<8x32xf32> -> vector<8x32xf32>
    %173 = arith.addf %168, %172 : vector<8x32xf32>
    %174 = vector.extract_strided_slice %107 {offsets = [104, 0], sizes = [8, 16], strides = [1, 1]} : vector<128x16xbf16> to vector<8x16xbf16>
    %c13_120 = arith.constant 13 : index
    %c0_121 = arith.constant 0 : index
    %c0_122 = arith.constant 0 : index
    %175 = vector.load %arg8[%c13_120, %c0_121, %c0_122] : memref<16x16x32xbf16, #tpu.memory_space<vmem>>, vector<1x16x32xbf16>
    %176 = vector.shape_cast %175 : vector<1x16x32xbf16> to vector<16x32xbf16>
    %cst_123 = arith.constant dense<0.000000e+00> : vector<8x32xf32>
    %177 = tpu.matmul %174, %176, %cst_123 {dimension_numbers = #tpu.dot_dimension_numbers<[1], [0], [0], [1], [0, 0, 1, 1], [], []>} : vector<8x16xbf16>, vector<16x32xbf16>, vector<8x32xf32> -> vector<8x32xf32>
    %178 = arith.addf %173, %177 : vector<8x32xf32>
    %179 = vector.extract_strided_slice %107 {offsets = [112, 0], sizes = [8, 16], strides = [1, 1]} : vector<128x16xbf16> to vector<8x16xbf16>
    %c14_124 = arith.constant 14 : index
    %c0_125 = arith.constant 0 : index
    %c0_126 = arith.constant 0 : index
    %180 = vector.load %arg8[%c14_124, %c0_125, %c0_126] : memref<16x16x32xbf16, #tpu.memory_space<vmem>>, vector<1x16x32xbf16>
    %181 = vector.shape_cast %180 : vector<1x16x32xbf16> to vector<16x32xbf16>
    %cst_127 = arith.constant dense<0.000000e+00> : vector<8x32xf32>
    %182 = tpu.matmul %179, %181, %cst_127 {dimension_numbers = #tpu.dot_dimension_numbers<[1], [0], [0], [1], [0, 0, 1, 1], [], []>} : vector<8x16xbf16>, vector<16x32xbf16>, vector<8x32xf32> -> vector<8x32xf32>
    %183 = arith.addf %178, %182 : vector<8x32xf32>
    %184 = vector.extract_strided_slice %107 {offsets = [120, 0], sizes = [8, 16], strides = [1, 1]} : vector<128x16xbf16> to vector<8x16xbf16>
    %c15_128 = arith.constant 15 : index
    %c0_129 = arith.constant 0 : index
    %c0_130 = arith.constant 0 : index
    %185 = vector.load %arg8[%c15_128, %c0_129, %c0_130] : memref<16x16x32xbf16, #tpu.memory_space<vmem>>, vector<1x16x32xbf16>
    %186 = vector.shape_cast %185 : vector<1x16x32xbf16> to vector<16x32xbf16>
    %cst_131 = arith.constant dense<0.000000e+00> : vector<8x32xf32>
    %187 = tpu.matmul %184, %186, %cst_131 {dimension_numbers = #tpu.dot_dimension_numbers<[1], [0], [0], [1], [0, 0, 1, 1], [], []>} : vector<8x16xbf16>, vector<16x32xbf16>, vector<8x32xf32> -> vector<8x32xf32>
    %188 = arith.addf %183, %187 : vector<8x32xf32>
    %c0_132 = arith.constant 0 : index
    %c0_133 = arith.constant 0 : index
    %189 = vector.load %arg9[%c0_132, %c0_133] : memref<1x32xf32, #tpu.memory_space<vmem>>, vector<1x32xf32>
    %190 = vector.broadcast %189 : vector<1x32xf32> to vector<8x32xf32>
    %191 = arith.addf %188, %190 : vector<8x32xf32>
    %cst_134 = arith.constant 0.000000e+00 : f32
    %192 = vector.broadcast %cst_134 : f32 to vector<8x32xf32>
    %193 = arith.cmpf oge, %191, %192 : vector<8x32xf32>
    %cst_135 = arith.constant 2.000000e-01 : f32
    %194 = vector.broadcast %cst_135 : f32 to vector<8x32xf32>
    %195 = arith.mulf %194, %191 : vector<8x32xf32>
    %196 = arith.select %193, %191, %195 : vector<8x32xi1>, vector<8x32xf32>
    %197 = arith.truncf %196 : vector<8x32xf32> to vector<8x32xbf16>
    %cst_136 = arith.constant 0.000000e+00 : f32
    %198 = vector.broadcast %cst_136 : f32 to vector<2x128xf32>
    %c0_137 = arith.constant 0 : index
    %c0_138 = arith.constant 0 : index
    %c0_139 = arith.constant 0 : index
    %199 = vector.load %arg10[%c0_137, %c0_138, %c0_139] : memref<4x2x8xbf16, #tpu.memory_space<vmem>>, vector<1x2x8xbf16>
    %200 = vector.shape_cast %199 : vector<1x2x8xbf16> to vector<2x8xbf16>
    %cst_140 = arith.constant dense<0.000000e+00> : vector<2x32xf32>
    %201 = tpu.matmul %200, %197, %cst_140 {dimension_numbers = #tpu.dot_dimension_numbers<[1], [0], [0], [1], [0, 0, 1, 1], [], []>} : vector<2x8xbf16>, vector<8x32xbf16>, vector<2x32xf32> -> vector<2x32xf32>
    %202 = arith.truncf %201 : vector<2x32xf32> to vector<2x32xbf16>
    %c0_141 = arith.constant 0 : index
    %c0_142 = arith.constant 0 : index
    %c0_143 = arith.constant 0 : index
    %203 = vector.load %arg11[%c0_141, %c0_142, %c0_143] : memref<4x32x128xbf16, #tpu.memory_space<vmem>>, vector<1x32x128xbf16>
    %204 = vector.shape_cast %203 : vector<1x32x128xbf16> to vector<32x128xbf16>
    %cst_144 = arith.constant dense<0.000000e+00> : vector<2x128xf32>
    %205 = tpu.matmul %202, %204, %cst_144 {dimension_numbers = #tpu.dot_dimension_numbers<[1], [0], [0], [1], [0, 0, 1, 1], [], []>} : vector<2x32xbf16>, vector<32x128xbf16>, vector<2x128xf32> -> vector<2x128xf32>
    %206 = arith.addf %198, %205 : vector<2x128xf32>
    %c1_145 = arith.constant 1 : index
    %c0_146 = arith.constant 0 : index
    %c0_147 = arith.constant 0 : index
    %207 = vector.load %arg10[%c1_145, %c0_146, %c0_147] : memref<4x2x8xbf16, #tpu.memory_space<vmem>>, vector<1x2x8xbf16>
    %208 = vector.shape_cast %207 : vector<1x2x8xbf16> to vector<2x8xbf16>
    %cst_148 = arith.constant dense<0.000000e+00> : vector<2x32xf32>
    %209 = tpu.matmul %208, %197, %cst_148 {dimension_numbers = #tpu.dot_dimension_numbers<[1], [0], [0], [1], [0, 0, 1, 1], [], []>} : vector<2x8xbf16>, vector<8x32xbf16>, vector<2x32xf32> -> vector<2x32xf32>
    %210 = arith.truncf %209 : vector<2x32xf32> to vector<2x32xbf16>
    %c1_149 = arith.constant 1 : index
    %c0_150 = arith.constant 0 : index
    %c0_151 = arith.constant 0 : index
    %211 = vector.load %arg11[%c1_149, %c0_150, %c0_151] : memref<4x32x128xbf16, #tpu.memory_space<vmem>>, vector<1x32x128xbf16>
    %212 = vector.shape_cast %211 : vector<1x32x128xbf16> to vector<32x128xbf16>
    %cst_152 = arith.constant dense<0.000000e+00> : vector<2x128xf32>
    %213 = tpu.matmul %210, %212, %cst_152 {dimension_numbers = #tpu.dot_dimension_numbers<[1], [0], [0], [1], [0, 0, 1, 1], [], []>} : vector<2x32xbf16>, vector<32x128xbf16>, vector<2x128xf32> -> vector<2x128xf32>
    %214 = arith.addf %206, %213 : vector<2x128xf32>
    %c2_153 = arith.constant 2 : index
    %c0_154 = arith.constant 0 : index
    %c0_155 = arith.constant 0 : index
    %215 = vector.load %arg10[%c2_153, %c0_154, %c0_155] : memref<4x2x8xbf16, #tpu.memory_space<vmem>>, vector<1x2x8xbf16>
    %216 = vector.shape_cast %215 : vector<1x2x8xbf16> to vector<2x8xbf16>
    %cst_156 = arith.constant dense<0.000000e+00> : vector<2x32xf32>
    %217 = tpu.matmul %216, %197, %cst_156 {dimension_numbers = #tpu.dot_dimension_numbers<[1], [0], [0], [1], [0, 0, 1, 1], [], []>} : vector<2x8xbf16>, vector<8x32xbf16>, vector<2x32xf32> -> vector<2x32xf32>
    %218 = arith.truncf %217 : vector<2x32xf32> to vector<2x32xbf16>
    %c2_157 = arith.constant 2 : index
    %c0_158 = arith.constant 0 : index
    %c0_159 = arith.constant 0 : index
    %219 = vector.load %arg11[%c2_157, %c0_158, %c0_159] : memref<4x32x128xbf16, #tpu.memory_space<vmem>>, vector<1x32x128xbf16>
    %220 = vector.shape_cast %219 : vector<1x32x128xbf16> to vector<32x128xbf16>
    %cst_160 = arith.constant dense<0.000000e+00> : vector<2x128xf32>
    %221 = tpu.matmul %218, %220, %cst_160 {dimension_numbers = #tpu.dot_dimension_numbers<[1], [0], [0], [1], [0, 0, 1, 1], [], []>} : vector<2x32xbf16>, vector<32x128xbf16>, vector<2x128xf32> -> vector<2x128xf32>
    %222 = arith.addf %214, %221 : vector<2x128xf32>
    %c3_161 = arith.constant 3 : index
    %c0_162 = arith.constant 0 : index
    %c0_163 = arith.constant 0 : index
    %223 = vector.load %arg10[%c3_161, %c0_162, %c0_163] : memref<4x2x8xbf16, #tpu.memory_space<vmem>>, vector<1x2x8xbf16>
    %224 = vector.shape_cast %223 : vector<1x2x8xbf16> to vector<2x8xbf16>
    %cst_164 = arith.constant dense<0.000000e+00> : vector<2x32xf32>
    %225 = tpu.matmul %224, %197, %cst_164 {dimension_numbers = #tpu.dot_dimension_numbers<[1], [0], [0], [1], [0, 0, 1, 1], [], []>} : vector<2x8xbf16>, vector<8x32xbf16>, vector<2x32xf32> -> vector<2x32xf32>
    %226 = arith.truncf %225 : vector<2x32xf32> to vector<2x32xbf16>
    %c3_165 = arith.constant 3 : index
    %c0_166 = arith.constant 0 : index
    %c0_167 = arith.constant 0 : index
    %227 = vector.load %arg11[%c3_165, %c0_166, %c0_167] : memref<4x32x128xbf16, #tpu.memory_space<vmem>>, vector<1x32x128xbf16>
    %228 = vector.shape_cast %227 : vector<1x32x128xbf16> to vector<32x128xbf16>
    %cst_168 = arith.constant dense<0.000000e+00> : vector<2x128xf32>
    %229 = tpu.matmul %226, %228, %cst_168 {dimension_numbers = #tpu.dot_dimension_numbers<[1], [0], [0], [1], [0, 0, 1, 1], [], []>} : vector<2x32xbf16>, vector<32x128xbf16>, vector<2x128xf32> -> vector<2x128xf32>
    %230 = arith.addf %222, %229 : vector<2x128xf32>
    %c0_169 = arith.constant 0 : index
    %c0_170 = arith.constant 0 : index
    %231 = vector.load %arg12[%c0_169, %c0_170] : memref<1x128xf32, #tpu.memory_space<vmem>>, vector<1x128xf32>
    %232 = vector.broadcast %231 : vector<1x128xf32> to vector<2x128xf32>
    %233 = arith.addf %230, %232 : vector<2x128xf32>
    %cst_171 = arith.constant 0.000000e+00 : f32
    %234 = vector.broadcast %cst_171 : f32 to vector<2x128xf32>
    %235 = arith.cmpf oge, %233, %234 : vector<2x128xf32>
    %cst_172 = arith.constant 2.000000e-01 : f32
    %236 = vector.broadcast %cst_172 : f32 to vector<2x128xf32>
    %237 = arith.mulf %236, %233 : vector<2x128xf32>
    %238 = arith.select %235, %233, %237 : vector<2x128xi1>, vector<2x128xf32>
    %c0_173 = arith.constant 0 : index
    %c0_174 = arith.constant 0 : index
    %239 = vector.load %arg13[%c0_173, %c0_174] : memref<1x128xf32, #tpu.memory_space<vmem>>, vector<1x128xf32>
    %240 = vector.broadcast %239 : vector<1x128xf32> to vector<2x128xf32>
    %241 = arith.mulf %238, %240 : vector<2x128xf32>
    %cst_175 = arith.constant dense<0.000000e+00> : vector<2xf32>
    %242 = vector.multi_reduction <add>, %241, %cst_175 [1] : vector<2x128xf32> to vector<2xf32>
    %243 = vector.shape_cast %242 : vector<2xf32> to vector<2x1xf32>
    %c0_176 = arith.constant 0 : index
    %c0_177 = arith.constant 0 : index
    %244 = vector.load %arg14[%c0_176, %c0_177] : memref<1x1xf32, #tpu.memory_space<vmem>>, vector<1x1xf32>
    %245 = vector.broadcast %244 : vector<1x1xf32> to vector<2x1xf32>
    %246 = arith.addf %243, %245 : vector<2x1xf32>
    %c0_178 = arith.constant 0 : index
    %c0_179 = arith.constant 0 : index
    %247 = vector.load %arg15[%c0_178, %c0_179] : memref<2x1xf32, #tpu.memory_space<vmem>>, vector<2x1xf32>
    tpu.vector_store %arg15[%c0_178, %c0_179], %246 {strides = array<i32>} : memref<2x1xf32, #tpu.memory_space<vmem>>, vector<2x1xf32>,
    return
  }
  func.func @transform_0(%arg0: i32) -> (i32, i32) {
    %c0_i32 = arith.constant 0 : i32
    %c0_i32_0 = arith.constant 0 : i32
    %c0_i32_1 = arith.constant 0 : i32
    return %c0_i32, %c0_i32_0 : i32, i32
  }
  func.func @transform_1(%arg0: i32) -> (i32, i32) {
    %c0_i32 = arith.constant 0 : i32
    %c0_i32_0 = arith.constant 0 : i32
    %c0_i32_1 = arith.constant 0 : i32
    return %c0_i32, %c0_i32_0 : i32, i32
  }
  func.func @transform_2(%arg0: i32) -> (i32, i32) {
    %c0_i32 = arith.constant 0 : i32
    %c0_i32_0 = arith.constant 0 : i32
    %c0_i32_1 = arith.constant 0 : i32
    return %c0_i32, %c0_i32_0 : i32, i32
  }
  func.func @transform_3(%arg0: i32) -> (i32, i32) {
    %c0_i32 = arith.constant 0 : i32
    %c0_i32_0 = arith.constant 0 : i32
    %c0_i32_1 = arith.constant 0 : i32
    return %c0_i32, %c0_i32_0 : i32, i32
  }
  func.func @transform_4(%arg0: i32) -> (i32, i32, i32) {
    %c0_i32 = arith.constant 0 : i32
    %c0_i32_0 = arith.constant 0 : i32
    %c0_i32_1 = arith.constant 0 : i32
    %c0_i32_2 = arith.constant 0 : i32
    return %c0_i32, %c0_i32_0, %c0_i32_1 : i32, i32, i32
  }
  func.func @transform_5(%arg0: i32) -> (i32, i32) {
    %c0_i32 = arith.constant 0 : i32
    %c0_i32_0 = arith.constant 0 : i32
    %c0_i32_1 = arith.constant 0 : i32
    return %c0_i32, %c0_i32_0 : i32, i32
  }
  func.func @transform_6(%arg0: i32) -> (i32, i32) {
    %c0_i32 = arith.constant 0 : i32
    %c0_i32_0 = arith.constant 0 : i32
    %c0_i32_1 = arith.constant 0 : i32
    return %c0_i32, %c0_i32_0 : i32, i32
  }
  func.func @transform_7(%arg0: i32) -> (i32, i32, i32) {
    %c0_i32 = arith.constant 0 : i32
    %c0_i32_0 = arith.constant 0 : i32
    %c0_i32_1 = arith.constant 0 : i32
    %c0_i32_2 = arith.constant 0 : i32
    return %c0_i32, %c0_i32_0, %c0_i32_1 : i32, i32, i32
  }
  func.func @transform_8(%arg0: i32) -> (i32, i32) {
    %c0_i32 = arith.constant 0 : i32
    %c0_i32_0 = arith.constant 0 : i32
    %c0_i32_1 = arith.constant 0 : i32
    return %c0_i32, %c0_i32_0 : i32, i32
  }
  func.func @transform_9(%arg0: i32) -> (i32, i32, i32) {
    %c0_i32 = arith.constant 0 : i32
    %c0_i32_0 = arith.constant 0 : i32
    %c0_i32_1 = arith.constant 0 : i32
    %c0_i32_2 = arith.constant 0 : i32
    return %c0_i32, %c0_i32_0, %c0_i32_1 : i32, i32, i32
  }
  func.func @transform_10(%arg0: i32) -> (i32, i32, i32) {
    %c0_i32 = arith.constant 0 : i32
    %c0_i32_0 = arith.constant 0 : i32
    %c0_i32_1 = arith.constant 0 : i32
    %c0_i32_2 = arith.constant 0 : i32
    return %c0_i32, %c0_i32_0, %c0_i32_1 : i32, i32, i32
  }
  func.func @transform_11(%arg0: i32) -> (i32, i32) {
    %c0_i32 = arith.constant 0 : i32
    %c0_i32_0 = arith.constant 0 : i32
    %c0_i32_1 = arith.constant 0 : i32
    return %c0_i32, %c0_i32_0 : i32, i32
  }
  func.func @transform_12(%arg0: i32) -> (i32, i32) {
    %c0_i32 = arith.constant 0 : i32
    %c0_i32_0 = arith.constant 0 : i32
    %c0_i32_1 = arith.constant 0 : i32
    return %c0_i32, %c0_i32_0 : i32, i32
  }
  func.func @transform_13(%arg0: i32) -> (i32, i32) {
    %c0_i32 = arith.constant 0 : i32
    %c0_i32_0 = arith.constant 0 : i32
    %c0_i32_1 = arith.constant 0 : i32
    return %c0_i32, %c0_i32_0 : i32, i32
  }
  func.func @transform_14(%arg0: i32) -> (i32, i32) {
    %c0_i32 = arith.constant 0 : i32
    %c0_i32_0 = arith.constant 0 : i32
    %c0_i32_1 = arith.constant 0 : i32
    return %c0_i32, %c0_i32_0 : i32, i32
  }
}

</mosaic_0001>

<bundles_post_ra>
// kernel: discriminator_forward.1
= control target key start
LH: loop header
LB: loop body
LE: loop exit
PB: predicated region body
PF: predicated region fallthrough
CT: control target
= control target key end

     0   :  { %vm145_vm0 = vcmask 523264   ;;  %s4959_s1 = inlined_call_operand.vmem [shape: bf16[64,8], index: 1, kind: input, shape index: {}]   ;;  %s4960_s0 = inlined_call_operand.vmem [shape: bf16[128,64], index: 0, kind: input, shape index: {}]   ;;  %s4961_s3 = inlined_call_operand.vmem [shape: bf16[512,128], index: 3, kind: input, shape index: {}]   ;;  %s4962_s2 = inlined_call_operand.vmem [shape: f32[1,8], index: 2, kind: input, shape index: {}]   ;;  %s4963_s4 = inlined_call_operand.vmem [shape: bf16[16,8,16], index: 4, kind: input, shape index: {}]   ;;  %s4964_s6 = inlined_call_operand.vmem [shape: bf16[128,32], index: 6, kind: input, shape index: {}]   ;;  %s4965_s5 = inlined_call_operand.vmem [shape: f32[1,16], index: 5, kind: input, shape index: {}]   ;;  %s4966_s7 = inlined_call_operand.vmem [shape: bf16[16,16,32], index: 7, kind: input, shape index: {}]   ;;  %s4967_s10 = inlined_call_operand.vmem [shape: bf16[4,32,128], index: 10, kind: input, shape index: {}]   ;;  %s4968_s8 = inlined_call_operand.vmem [shape: f32[1,32], index: 8, kind: input, shape index: {}]   ;;  %s4969_s9 = inlined_call_operand.vmem [shape: bf16[4,2,8], index: 9, kind: input, shape index: {}]   ;;  %s4970_s13 = inlined_call_operand.<no memory space> [shape: f32[1,1], index: 13, kind: input, shape index: {}]   ;;  %s4971_s11 = inlined_call_operand.vmem [shape: f32[1,128], index: 11, kind: input, shape index: {}]   ;;  %s4972_s12 = inlined_call_operand.vmem [shape: f32[1,128], index: 12, kind: input, shape index: {}]   ;;  %s4973_s14 = inlined_call_operand.vmem [shape: f32[2,1], index: 14, kind: output, shape index: {}]  }
   0x1   :  { %v4292_v0 = vld [vmem:[%s4959_s1] sm:$0xff]   ;;  %v4293_v1 = vld [vmem:[%s4959_s1 + $0x8] sm:$0xff]   ;;  %v4294_v2 = vld [vmem:[%s4959_s1 + $0x10] sm:$0xff]  }
   0x2   :  { %3842 = vmatprep.subr.bf16.mxu0 %v4292_v0  ;;  %v4296_v3 = vld [vmem:[%s4960_s0] sm:$0xff]   ;;  %v4295_v4 = vld [vmem:[%s4959_s1 + $0x18] sm:$0xff]   ;;  %v4297_v5 = vld [vmem:[%s4960_s0 + $0x8] sm:$0xff]  }
   0x3   :  { %3843 = vmatpush3.bf16.msra.mxu0 %v4292_v0  ;;  %3850 = vmatprep.mubr.msk.bf16.mxu0 %vm145_vm0, %v4296_v3  ;;  %v4298_v6 = vld [vmem:[%s4960_s0 + $0x10] sm:$0xff]   ;;  %v4299_v7 = vld [vmem:[%s4960_s0 + $0x18] sm:$0xff]   ;;  %v4300_v8 = vld [vmem:[%s4960_s0 + $0x20] sm:$0xff]  }
   0x4   :  { %3844 = vmatprep.subr.bf16.mxu0 %v4293_v1  ;;  %v4301_v9 = vld [vmem:[%s4960_s0 + $0x28] sm:$0xff]   ;;  %v4302_v10 = vld [vmem:[%s4960_s0 + $0x30] sm:$0xff]   ;;  %v4303_v11 = vld [vmem:[%s4960_s0 + $0x38] sm:$0xff]  }
   0x5   :  { %v4304_v12 = vld [vmem:[%s4961_s3] sm:$0xff]  }
   0x6   :  { %3882 = vmatprep.mubr.bf16.mxu1 %v4304_v12  ;;  %v4495_v13 = vld [vmem:[%s4962_s2] ss:$0 sm:$0xff] }
   0x7   :  { %3845 = vmatpush3.bf16.msra.mxu0 %v4293_v1 }
   0x8   :  { %3846 = vmatprep.subr.bf16.mxu0 %v4294_v2 }
   0xb   :  { %3847 = vmatpush3.bf16.msra.mxu0 %v4294_v2 }
   0xc   :  { %3848 = vmatprep.subr.bf16.mxu0 %v4295_v4 }
   0xf   :  { %3849 = vmatpush3.bf16.msra.mxu0 %v4295_v4 }
  0x12   :  { %3851 = vmatmul.mubr.msk.bf16.vlgmr.msra.gmra.mrb[0].mxu0 %vm145_vm0, %v4297_v5 }
  0x13   :  { %3854 = vmatprep.mubr.msk.bf16.mxu0 %vm145_vm0, %v4298_v6 }
  0x1a   :  { %3855 = vmatmul.mubr.msk.bf16.gmra.mrb[4].mxu0 %vm145_vm0, %v4299_v7 }
  0x1b   :  { %3858 = vmatprep.mubr.msk.bf16.mxu0 %vm145_vm0, %v4300_v8 }
  0x22   :  { %3859 = vmatmul.mubr.msk.bf16.gmra.mrb[8].mxu0 %vm145_vm0, %v4301_v9 }
  0x23   :  { %3862 = vmatprep.mubr.msk.bf16.mxu0 %vm145_vm0, %v4302_v10 }
  0x2a   :  { %3863 = vmatmul.mubr.msk.bf16.gmra.mrb[12].mxu0 %vm145_vm0, %v4303_v11 }
  0xe5   :  { %v3852_v14 = vpop.f32.mrb[0].mxu0 }
  0xe6   :  { %v213_v15 = vadd.f32 %v3852_v14, %v4495_v13  ;;  %v204_v16 = vpop.f32.mrb[1].mxu0 }
  0xe7   :  { %v205_v17 = vadd.f32 %v4495_v13, %v204_v16  ;;  %v3853_v18 = vpop.f32.mrb[2].mxu0 }
  0xe8   :  { %v285_v19 = vmul.f32 0.2, %v213_v15  ;;  %v216_v20 = vadd.f32 %v3853_v18, %v4495_v13  ;;  %v207_v21 = vpop.f32.mrb[3].mxu0  ;;  %vm269_vm1 = vcmp.ge.f32.partialorder %v213_v15, 0.0 }
  0xe9   :  { %v283_v22 = vmul.f32 0.2, %v205_v17  ;;  %v208_v23 = vadd.f32 %v4495_v13, %v207_v21  ;;  %vm267_vm3 = vcmp.ge.f32.partialorder %v205_v17, 0.0 }
  0xea   :  { %vm270_vm2 = vcmp.ge.f32.partialorder %v216_v20, 0.0  ;;  %v286_v24 = vmul.f32 0.2, %v216_v20  ;;  %v301_v26 = vsel %vm269_vm1, %v213_v15, %v285_v19  ;;  %vm910_vm1 = vcmask 1043456  }
  0xeb   :  { %v284_v25 = vmul.f32 0.2, %v208_v23  ;;  %vm268_vm4 = vcmp.ge.f32.partialorder %v208_v23, 0.0  ;;  %v299_v29 = vsel %vm267_vm3, %v205_v17, %v283_v22  ;;  %vm1998_vm3 = vcmask 261120  }
  0xec   :  { %v302_v27 = vsel %vm270_vm2, %v216_v20, %v286_v24  ;;  %v4307_v24 = vld [vmem:[%s4961_s3 + $0x18] sm:$0xff]   ;;  %vm903_vm2 = vcmask 64512  }
  0xed   :  { %v3856_v28 = vpop.f32.mrb[4].mxu0  ;;  %v300_v30 = vsel %vm268_vm4, %v208_v23, %v284_v25  ;;  %v316_v31 = vpack.c.bf16 %v302_v27, %v301_v26  ;;  %v4306_v23 = vld [vmem:[%s4961_s3 + $0x10] sm:$0xff]   ;;  %v4308_v25 = vld [vmem:[%s4961_s3 + $0x20] sm:$0xff]   ;;  %v4309_v26 = vld [vmem:[%s4961_s3 + $0x28] sm:$0xff]  }
  0xee   :  { %v229_v32 = vadd.f32 %v3856_v28, %v4495_v13  ;;  %v220_v33 = vpop.f32.mrb[5].mxu0  ;;  %v315_v34 = vpack.c.bf16 %v300_v30, %v299_v29  ;;  %v4310_v27 = vld [vmem:[%s4961_s3 + $0x30] sm:$0xff]   ;;  %v4311_v28 = vld [vmem:[%s4961_s3 + $0x38] sm:$0xff]   ;;  %v4312_v29 = vld [vmem:[%s4961_s3 + $0x40] sm:$0xff]  }
  0xef   :  { %v221_v35 = vadd.f32 %v4495_v13, %v220_v33  ;;  %v3857_v36 = vpop.f32.mrb[6].mxu0  ;;  %v4313_v30 = vld [vmem:[%s4961_s3 + $0x48] sm:$0xff]   ;;  %v4316_v33 = vld [vmem:[%s4961_s3 + $0x60] sm:$0xff]  }
  0xf0   :  { %v289_v37 = vmul.f32 0.2, %v229_v32  ;;  %v232_v38 = vadd.f32 %v3857_v36, %v4495_v13  ;;  %v223_v39 = vpop.f32.mrb[7].mxu0  ;;  %3866 = vmatprep.subr.bf16.mxu1 %v315_v34  ;;  %vm273_vm5 = vcmp.ge.f32.partialorder %v229_v32, 0.0  ;;  %v4319_v36 = vld [vmem:[%s4961_s3 + $0x78] sm:$0xff]  }
  0xf1   :  { %v287_v40 = vmul.f32 0.2, %v221_v35  ;;  %v224_v41 = vadd.f32 %v4495_v13, %v223_v39  ;;  %3867 = vmatpush3.bf16.msra.mxu1 %v315_v34  ;;  %vm271_vm6 = vcmp.ge.f32.partialorder %v221_v35, 0.0  ;;  %v4317_v34 = vld [vmem:[%s4961_s3 + $0x68] sm:$0xff]   ;;  %v4322_v39 = vld [vmem:[%s4961_s3 + $0x90] sm:$0xff]  }
  0xf2   :  { %vm274_vm7 = vcmp.ge.f32.partialorder %v232_v38, 0.0  ;;  %v290_v42 = vmul.f32 0.2, %v232_v38  ;;  %3868 = vmatprep.subr.bf16.mxu1 %v316_v31  ;;  %v305_v44 = vsel %vm273_vm5, %v229_v32, %v289_v37  ;;  %v4315_v32 = vld [vmem:[%s4961_s3 + $0x58] sm:$0xff]   ;;  %v4320_v37 = vld [vmem:[%s4961_s3 + $0x80] sm:$0xff]  }
  0xf3   :  { %vm272_vm8 = vcmp.ge.f32.partialorder %v224_v41, 0.0  ;;  %v288_v43 = vmul.f32 0.2, %v224_v41  ;;  %v303_v47 = vsel %vm271_vm6, %v221_v35, %v287_v40  ;;  %v4318_v35 = vld [vmem:[%s4961_s3 + $0x70] sm:$0xff]   ;;  %v4323_v40 = vld [vmem:[%s4961_s3 + $0x98] sm:$0xff]  }
  0xf4   :  { %v306_v45 = vsel %vm274_vm7, %v232_v38, %v290_v42  ;;  %v4321_v38 = vld [vmem:[%s4961_s3 + $0x88] sm:$0xff]  }
  0xf5   :  { %v3860_v46 = vpop.f32.mrb[8].mxu0  ;;  %3869 = vmatpush3.bf16.msra.mxu1 %v316_v31  ;;  %v304_v48 = vsel %vm272_vm8, %v224_v41, %v288_v43  ;;  %v318_v49 = vpack.c.bf16 %v306_v45, %v305_v44  ;;  %v4314_v31 = vld [vmem:[%s4961_s3 + $0x50] sm:$0xff]   ;;  %v4324_v41 = vld [vmem:[%s4961_s3 + $0xa0] sm:$0xff]   ;;  %v4325_v42 = vld [vmem:[%s4961_s3 + $0xa8] sm:$0xff]   ;;  %vm4369_vm8 = vmmov 0  }
  0xf6   :  { %v245_v50 = vadd.f32 %v3860_v46, %v4495_v13  ;;  %v236_v51 = vpop.f32.mrb[9].mxu0  ;;  %v317_v52 = vpack.c.bf16 %v304_v48, %v303_v47  ;;  %v4326_v43 = vld [vmem:[%s4961_s3 + $0xb0] sm:$0xff]   ;;  %v4327_v44 = vld [vmem:[%s4961_s3 + $0xb8] sm:$0xff]   ;;  %v4328_v45 = vld [vmem:[%s4961_s3 + $0xc0] sm:$0xff]  }
  0xf7   :  { %v237_v53 = vadd.f32 %v4495_v13, %v236_v51  ;;  %v3861_v54 = vpop.f32.mrb[10].mxu0  ;;  %v4329_v46 = vld [vmem:[%s4961_s3 + $0xc8] sm:$0xff]   ;;  %v4330_v47 = vld [vmem:[%s4961_s3 + $0xd0] sm:$0xff]   ;;  %v3519_v48 = vld [vmem:[%s4963_s4 + $0x4] sm:$0xf] }
  0xf8   :  { %v293_v55 = vmul.f32 0.2, %v245_v50  ;;  %v248_v56 = vadd.f32 %v3861_v54, %v4495_v13  ;;  %v239_v57 = vpop.f32.mrb[11].mxu0  ;;  %3870 = vmatprep.subr.bf16.mxu1 %v317_v52  ;;  %vm277_vm9 = vcmp.ge.f32.partialorder %v245_v50, 0.0  ;;  %4274 = vmatprep.subr.msk.bf16.mxu0 %vm910_vm1, %v3519_v48  ;;  %v4331_v51 = vld [vmem:[%s4961_s3 + $0xd8] sm:$0xff]   ;;  %v4334_v54 = vld [vmem:[%s4961_s3 + $0xf0] sm:$0xff]  }
  0xf9   :  { %v291_v58 = vmul.f32 0.2, %v237_v53  ;;  %v240_v59 = vadd.f32 %v4495_v13, %v239_v57  ;;  %3871 = vmatpush3.bf16.msra.mxu1 %v317_v52  ;;  %vm275_vm10 = vcmp.ge.f32.partialorder %v237_v53, 0.0  ;;  %v4332_v52 = vld [vmem:[%s4961_s3 + $0xe0] sm:$0xff]  }
  0xfa   :  { %vm278_vm11 = vcmp.ge.f32.partialorder %v248_v56, 0.0  ;;  %v294_v60 = vmul.f32 0.2, %v248_v56  ;;  %3872 = vmatprep.subr.bf16.mxu1 %v318_v49  ;;  %v309_v62 = vsel %vm277_vm9, %v245_v50, %v293_v55  ;;  %v900_v50 = vld [vmem:[%s4963_s4] sm:$0xf]  ;;  %v4335_v55 = vld [vmem:[%s4961_s3 + $0xf8] sm:$0xff]  }
  0xfb   :  { %vm276_vm12 = vcmp.ge.f32.partialorder %v240_v59, 0.0  ;;  %v292_v61 = vmul.f32 0.2, %v240_v59  ;;  %v307_v1 = vsel %vm275_vm10, %v237_v53, %v291_v58  ;;  %v4333_v53 = vld [vmem:[%s4961_s3 + $0xe8] sm:$0xff]   ;;  %vm2141_vm9 = vcmask 130048  }
  0xfc   :  { %v310_v63 = vsel %vm278_vm11, %v248_v56, %v294_v60 }
  0xfd   :  { %v3864_v0 = vpop.f32.mrb[12].mxu0  ;;  %3873 = vmatpush3.bf16.msra.mxu1 %v318_v49  ;;  %v308_v2 = vsel %vm276_vm12, %v240_v59, %v292_v61  ;;  %v320_v3 = vpack.c.bf16 %v310_v63, %v309_v62  ;;  %v912_v49 = vsel %vm910_vm1, %v3519_v48, 0  ;;  %vm3448_vm12 = vcmask 1041408  }
  0xfe   :  { %v261_v4 = vadd.f32 %v3864_v0, %v4495_v13  ;;  %v252_v5 = vpop.f32.mrb[13].mxu0  ;;  %v319_v6 = vpack.c.bf16 %v308_v2, %v307_v1  ;;  %3947 = vmatpush3.bf16.msra.mxu0 %v912_v49  ;;  %v3536_v49 = vld [vmem:[%s4963_s4 + $0x18] sm:$0xf] }
  0xff   :  { %v253_v7 = vadd.f32 %v4495_v13, %v252_v5  ;;  %v3865_v8 = vpop.f32.mrb[14].mxu0  ;;  %4275 = vmatprep.subr.msk.bf16.mxu0 %vm910_vm1, %v900_v50  ;;  %v3524_v5 = vld [vmem:[%s4963_s4 + $0x8] sm:$0xf] }
 0x100   :  { %v297_v9 = vmul.f32 0.2, %v261_v4  ;;  %v264_v10 = vadd.f32 %v3865_v8, %v4495_v13  ;;  %v255_v11 = vpop.f32.mrb[15].mxu0  ;;  %3874 = vmatprep.subr.bf16.mxu1 %v319_v6  ;;  %vm281_vm13 = vcmp.ge.f32.partialorder %v261_v4, 0.0 }
 0x101   :  { %v295_v12 = vmul.f32 0.2, %v253_v7  ;;  %v256_v14 = vadd.f32 %v4495_v13, %v255_v11  ;;  %3875 = vmatpush3.bf16.msra.mxu1 %v319_v6  ;;  %vm279_vm14 = vcmp.ge.f32.partialorder %v253_v7, 0.0  ;;  %v4305_v13 = vld [vmem:[%s4961_s3 + $0x8] sm:$0xff]  }
 0x102   :  { %vm282_vm15 = vcmp.ge.f32.partialorder %v264_v10, 0.0  ;;  %v298_v15 = vmul.f32 0.2, %v264_v10  ;;  %3876 = vmatprep.subr.bf16.mxu1 %v320_v3  ;;  %v313_v17 = vsel %vm281_vm13, %v261_v4, %v297_v9  ;;  %v970_v4 = vsel %vm910_vm1, %v900_v50, 0 }
 0x103   :  { %vm280_vm0 = vcmp.ge.f32.partialorder %v256_v14, 0.0  ;;  %v296_v16 = vmul.f32 0.2, %v256_v14  ;;  %v311_v19 = vsel %vm279_vm14, %v253_v7, %v295_v12  ;;  %vm3460_vm13 = vcmask 1024  }
 0x104   :  { %v314_v18 = vsel %vm282_vm15, %v264_v10, %v298_v15 }
 0x105   :  { %3877 = vmatpush3.bf16.msra.mxu1 %v320_v3  ;;  %v312_v20 = vsel %vm280_vm0, %v256_v14, %v296_v16  ;;  %v322_v21 = vpack.c.bf16 %v314_v18, %v313_v17  ;;  %v1030_v14 = vsel %vm910_vm1, %v3524_v5, 0  ;;  %v3527_v17 = vld [vmem:[%s4963_s4 + $0xc] sm:$0xf] }
 0x106   :  { %v321_v22 = vpack.c.bf16 %v312_v20, %v311_v19 }
 0x108   :  { %3878 = vmatprep.subr.bf16.mxu1 %v321_v22 }
 0x109   :  { %3879 = vmatpush3.bf16.msra.mxu1 %v321_v22 }
 0x10a   :  { %3880 = vmatprep.subr.bf16.mxu1 %v322_v21 }
 0x10d   :  { %3881 = vmatpush3.bf16.msra.mxu1 %v322_v21 }
 0x110   :  { %3883 = vmatmul.mubr.bf16.vlgmr.msra.gmra.mrb[0].mxu1 %v4305_v13 }
 0x111   :  { %3886 = vmatprep.mubr.bf16.mxu1 %v4306_v23 }
 0x118   :  { %3887 = vmatmul.mubr.bf16.gmra.mrb[4].mxu1 %v4307_v24 }
 0x119   :  { %3890 = vmatprep.mubr.bf16.mxu1 %v4308_v25 }
 0x120   :  { %3891 = vmatmul.mubr.bf16.gmra.mrb[8].mxu1 %v4309_v26  ;;  %v1094_v26 = vsel %vm910_vm1, %v3527_v17, 0 }
 0x121   :  { %3894 = vmatprep.mubr.bf16.mxu1 %v4310_v27  ;;  %v3530_v27 = vld [vmem:[%s4963_s4 + $0x10] sm:$0xf] }
 0x128   :  { %3895 = vmatmul.mubr.bf16.gmra.mrb[12].mxu1 %v4311_v28 }
 0x129   :  { %3898 = vmatprep.mubr.bf16.mxu1 %v4312_v29 }
 0x130   :  { %3899 = vmatmul.mubr.bf16.gmra.mrb[16].mxu1 %v4313_v30 }
 0x131   :  { %3902 = vmatprep.mubr.bf16.mxu1 %v4314_v31 }
 0x138   :  { %3903 = vmatmul.mubr.bf16.gmra.mrb[20].mxu1 %v4315_v32 }
 0x139   :  { %3906 = vmatprep.mubr.bf16.mxu1 %v4316_v33 }
 0x140   :  { %3907 = vmatmul.mubr.bf16.gmra.mrb[24].mxu1 %v4317_v34 }
 0x141   :  { %3910 = vmatprep.mubr.bf16.mxu1 %v4318_v35  ;;  %v1158_v35 = vsel %vm910_vm1, %v3530_v27, 0 }
 0x148   :  { %3911 = vmatmul.mubr.bf16.gmra.mrb[28].mxu1 %v4319_v36 }
 0x149   :  { %3914 = vmatprep.mubr.bf16.mxu1 %v4320_v37  ;;  %v3533_v37 = vld [vmem:[%s4963_s4 + $0x14] sm:$0xf] }
 0x14a   :  { %v1222_v48 = vsel %vm910_vm1, %v3533_v37, 0 }
 0x150   :  { %3915 = vmatmul.mubr.bf16.gmra.mrb[32].mxu1 %v4321_v38 }
 0x151   :  { %3918 = vmatprep.mubr.bf16.mxu1 %v4322_v39 }
 0x158   :  { %3919 = vmatmul.mubr.bf16.gmra.mrb[36].mxu1 %v4323_v40 }
 0x159   :  { %3922 = vmatprep.mubr.bf16.mxu1 %v4324_v41 }
 0x160   :  { %3923 = vmatmul.mubr.bf16.gmra.mrb[40].mxu1 %v4325_v42 }
 0x161   :  { %3926 = vmatprep.mubr.bf16.mxu1 %v4326_v43 }
 0x168   :  { %3927 = vmatmul.mubr.bf16.gmra.mrb[44].mxu1 %v4327_v44 }
 0x169   :  { %3930 = vmatprep.mubr.bf16.mxu1 %v4328_v45 }
 0x170   :  { %3931 = vmatmul.mubr.bf16.gmra.mrb[48].mxu1 %v4329_v46 }
 0x171   :  { %3934 = vmatprep.mubr.bf16.mxu1 %v4330_v47 }
 0x178   :  { %3935 = vmatmul.mubr.bf16.gmra.mrb[52].mxu1 %v4331_v51 }
 0x179   :  { %3938 = vmatprep.mubr.bf16.mxu1 %v4332_v52 }
 0x180   :  { %3939 = vmatmul.mubr.bf16.gmra.mrb[56].mxu1 %v4333_v53 }
 0x181   :  { %3942 = vmatprep.mubr.bf16.mxu1 %v4334_v54 }
 0x188   :  { %3943 = vmatmul.mubr.bf16.gmra.mrb[60].mxu1 %v4335_v55 }
 0x1e3   :  { %v3884_v56 = vpop.f32.mrb[0].mxu1 }
 0x1e4   :  { %v613_v57 = vpop.f32.mrb[1].mxu1 }
 0x1e5   :  { %v3885_v58 = vpop.f32.mrb[2].mxu1 }
 0x1e6   :  { %v869_v59 = vpack.c.bf16 %v3885_v58, %v3884_v56  ;;  %v616_v60 = vpop.f32.mrb[3].mxu1 }
 0x1e7   :  { %v868_v61 = vpack.c.bf16 %v616_v60, %v613_v57  ;;  %v1286_v57 = vsel %vm910_vm1, %v3536_v49, 0 }
 0x1eb   :  { %v3888_v62 = vpop.f32.mrb[4].mxu1 }
 0x1ec   :  { %v629_v63 = vpop.f32.mrb[5].mxu1 }
 0x1ed   :  { %v3889_v0 = vpop.f32.mrb[6].mxu1 }
 0x1ee   :  { %v871_v1 = vpack.c.bf16 %v3889_v0, %v3888_v62  ;;  %v632_v2 = vpop.f32.mrb[7].mxu1 }
 0x1ef   :  { %v870_v3 = vpack.c.bf16 %v632_v2, %v629_v63 }
 0x1f1   :  { %3948 = vmatprep.mubr.msk.bf16.mxu0 %vm903_vm2, %v870_v3 }
 0x1f2   :  { %3949 = vmatmul.mubr.msk.bf16.vlgmr.msra.gmra.mrb[16].mxu0 %vm903_vm2, %v871_v1 }
 0x1f3   :  { %3954 = vmatprep.mubr.msk.bf16.mxu0 %vm903_vm2, %v868_v61  ;;  %3953 = vmatpush3.bf16.msra.mxu0 %v970_v4  ;;  %v3892_v6 = vpop.f32.mrb[8].mxu1 }
 0x1f4   :  { %v645_v7 = vpop.f32.mrb[9].mxu1  ;;  %4276 = vmatprep.subr.msk.bf16.mxu0 %vm910_vm1, %v3524_v5 }
 0x1f5   :  { %v3893_v8 = vpop.f32.mrb[10].mxu1 }
 0x1f6   :  { %v873_v9 = vpack.c.bf16 %v3893_v8, %v3892_v6  ;;  %v648_v10 = vpop.f32.mrb[11].mxu1 }
 0x1f7   :  { %v872_v11 = vpack.c.bf16 %v648_v10, %v645_v7  ;;  %v3542_v7 = vld [vmem:[%s4963_s4 + $0x20] sm:$0xf] }
 0x1fb   :  { %v3896_v12 = vpop.f32.mrb[12].mxu1 }
 0x1fc   :  { %v661_v15 = vpop.f32.mrb[13].mxu1 }
 0x1fd   :  { %v3897_v16 = vpop.f32.mrb[14].mxu1 }
 0x1fe   :  { %3955 = vmatmul.mubr.msk.bf16.vlgmr.msra.gmra.mrb[16].mxu0 %vm903_vm2, %v869_v59  ;;  %v875_v18 = vpack.c.bf16 %v3897_v16, %v3896_v12  ;;  %v664_v19 = vpop.f32.mrb[15].mxu1  ;;  %v3539_v59 = vld [vmem:[%s4963_s4 + $0x1c] sm:$0xf]  ;;  %v1414_v16 = vsel %vm910_vm1, %v3542_v7, 0 }
 0x1ff   :  { %3960 = vmatprep.mubr.msk.bf16.mxu0 %vm903_vm2, %v872_v11  ;;  %3959 = vmatpush3.bf16.msra.mxu0 %v1030_v14  ;;  %v874_v20 = vpack.c.bf16 %v664_v19, %v661_v15  ;;  %v1350_v6 = vsel %vm910_vm1, %v3539_v59, 0 }
 0x200   :  { %4277 = vmatprep.subr.msk.bf16.mxu0 %vm910_vm1, %v3527_v17 }
 0x203   :  { %v3900_v21 = vpop.f32.mrb[16].mxu1 }
 0x204   :  { %v677_v22 = vpop.f32.mrb[17].mxu1 }
 0x205   :  { %v3901_v13 = vpop.f32.mrb[18].mxu1 }
 0x206   :  { %v877_v23 = vpack.c.bf16 %v3901_v13, %v3900_v21  ;;  %v680_v24 = vpop.f32.mrb[19].mxu1 }
 0x207   :  { %v876_v25 = vpack.c.bf16 %v680_v24, %v677_v22 }
 0x20a   :  { %3961 = vmatmul.mubr.msk.bf16.vlgmr.msra.gmra.mrb[16].mxu0 %vm903_vm2, %v873_v9 }
 0x20b   :  { %3966 = vmatprep.mubr.msk.bf16.mxu0 %vm903_vm2, %v874_v20  ;;  %3965 = vmatpush3.bf16.msra.mxu0 %v1094_v26  ;;  %v3904_v28 = vpop.f32.mrb[20].mxu1 }
 0x20c   :  { %4278 = vmatprep.subr.msk.bf16.mxu0 %vm910_vm1, %v3530_v27  ;;  %v693_v29 = vpop.f32.mrb[21].mxu1 }
 0x20d   :  { %v3905_v30 = vpop.f32.mrb[22].mxu1 }
 0x20e   :  { %v879_v31 = vpack.c.bf16 %v3905_v30, %v3904_v28  ;;  %v696_v32 = vpop.f32.mrb[23].mxu1 }
 0x20f   :  { %v878_v33 = vpack.c.bf16 %v696_v32, %v693_v29  ;;  %v3548_v29 = vld [vmem:[%s4963_s4 + $0x28] sm:$0xf] }
 0x213   :  { %v3908_v34 = vpop.f32.mrb[24].mxu1 }
 0x214   :  { %v709_v36 = vpop.f32.mrb[25].mxu1 }
 0x215   :  { %v3909_v38 = vpop.f32.mrb[26].mxu1 }
 0x216   :  { %3967 = vmatmul.mubr.msk.bf16.vlgmr.msra.gmra.mrb[16].mxu0 %vm903_vm2, %v875_v18  ;;  %v881_v39 = vpack.c.bf16 %v3909_v38, %v3908_v34  ;;  %v712_v40 = vpop.f32.mrb[27].mxu1  ;;  %v3545_v18 = vld [vmem:[%s4963_s4 + $0x24] sm:$0xf] }
 0x217   :  { %3972 = vmatprep.mubr.msk.bf16.mxu0 %vm903_vm2, %v876_v25  ;;  %3971 = vmatpush3.bf16.msra.mxu0 %v1158_v35  ;;  %v880_v41 = vpack.c.bf16 %v712_v40, %v709_v36  ;;  %v1478_v28 = vsel %vm910_vm1, %v3545_v18, 0 }
 0x218   :  { %4279 = vmatprep.subr.msk.bf16.mxu0 %vm910_vm1, %v3533_v37  ;;  %v1542_v37 = vsel %vm910_vm1, %v3548_v29, 0 }
 0x21b   :  { %v3912_v42 = vpop.f32.mrb[28].mxu1 }
 0x21c   :  { %v725_v43 = vpop.f32.mrb[29].mxu1 }
 0x21d   :  { %v3913_v44 = vpop.f32.mrb[30].mxu1 }
 0x21e   :  { %v883_v45 = vpack.c.bf16 %v3913_v44, %v3912_v42  ;;  %v728_v46 = vpop.f32.mrb[31].mxu1 }
 0x21f   :  { %v882_v47 = vpack.c.bf16 %v728_v46, %v725_v43 }
 0x222   :  { %3973 = vmatmul.mubr.msk.bf16.vlgmr.msra.gmra.mrb[16].mxu0 %vm903_vm2, %v877_v23 }
 0x223   :  { %3978 = vmatprep.mubr.msk.bf16.mxu0 %vm903_vm2, %v878_v33  ;;  %3977 = vmatpush3.bf16.msra.mxu0 %v1222_v48  ;;  %v3916_v50 = vpop.f32.mrb[32].mxu1 }
 0x224   :  { %4280 = vmatprep.subr.msk.bf16.mxu0 %vm910_vm1, %v3536_v49  ;;  %v741_v51 = vpop.f32.mrb[33].mxu1  ;;  %v3560_v49 = vld [vmem:[%s4963_s4 + $0x38] sm:$0xf] }
 0x225   :  { %v3917_v52 = vpop.f32.mrb[34].mxu1 }
 0x226   :  { %v885_v53 = vpack.c.bf16 %v3917_v52, %v3916_v50  ;;  %v744_v54 = vpop.f32.mrb[35].mxu1  ;;  %v1798_v50 = vsel %vm910_vm1, %v3560_v49, 0 }
 0x227   :  { %v884_v55 = vpack.c.bf16 %v744_v54, %v741_v51  ;;  %v3563_v51 = vld [vmem:[%s4963_s4 + $0x3c] sm:$0xf]  ;;  %v3566_v54 = vld [vmem:[%s4965_s5] ss:$0 sm:$0xff] }
 0x228   :  { %v1862_v52 = vsel %vm910_vm1, %v3563_v51, 0 }
 0x22b   :  { %v4651_v56 = vpop.f32.mrb[36].mxu1 }
 0x22c   :  { %v757_v58 = vpop.f32.mrb[37].mxu1 }
 0x22d   :  { %v3921_v60 = vpop.f32.mrb[38].mxu1 }
 0x22e   :  { %3979 = vmatmul.mubr.msk.bf16.vlgmr.msra.gmra.mrb[16].mxu0 %vm903_vm2, %v879_v31  ;;  %v887_v61 = vpack.c.bf16 %v3921_v60, %v4651_v56  ;;  %v760_v62 = vpop.f32.mrb[39].mxu1 }
 0x22f   :  { %3984 = vmatprep.mubr.msk.bf16.mxu0 %vm903_vm2, %v880_v41  ;;  %3983 = vmatpush3.bf16.msra.mxu0 %v1286_v57  ;;  %v886_v63 = vpack.c.bf16 %v760_v62, %v757_v58 }
 0x230   :  { %4281 = vmatprep.subr.msk.bf16.mxu0 %vm910_vm1, %v3539_v59 }
 0x233   :  { %v4661_v0 = vpop.f32.mrb[40].mxu1 }
 0x234   :  { %v773_v1 = vpop.f32.mrb[41].mxu1 }
 0x235   :  { %v3925_v2 = vpop.f32.mrb[42].mxu1 }
 0x236   :  { %v889_v3 = vpack.c.bf16 %v3925_v2, %v4661_v0  ;;  %v776_v4 = vpop.f32.mrb[43].mxu1 }
 0x237   :  { %v888_v5 = vpack.c.bf16 %v776_v4, %v773_v1 }
 0x23a   :  { %3985 = vmatmul.mubr.msk.bf16.vlgmr.msra.gmra.mrb[16].mxu0 %vm903_vm2, %v881_v39  ;;  %v3551_v39 = vld [vmem:[%s4963_s4 + $0x2c] sm:$0xf] }
 0x23b   :  { %3990 = vmatprep.mubr.msk.bf16.mxu0 %vm903_vm2, %v882_v47  ;;  %3989 = vmatpush3.bf16.msra.mxu0 %v1350_v6  ;;  %v3928_v8 = vpop.f32.mrb[44].mxu1  ;;  %v1606_v44 = vsel %vm910_vm1, %v3551_v39, 0  ;;  %v3557_v47 = vld [vmem:[%s4963_s4 + $0x34] sm:$0xf] }
 0x23c   :  { %4282 = vmatprep.subr.msk.bf16.mxu0 %vm910_vm1, %v3542_v7  ;;  %v789_v9 = vpop.f32.mrb[45].mxu1  ;;  %v1734_v48 = vsel %vm910_vm1, %v3557_v47, 0 }
 0x23d   :  { %v3929_v10 = vpop.f32.mrb[46].mxu1 }
 0x23e   :  { %v891_v11 = vpack.c.bf16 %v3929_v10, %v3928_v8  ;;  %v792_v12 = vpop.f32.mrb[47].mxu1  ;;  %v4338_v10 = vld [vmem:[%s4964_s6 + $0x10] sm:$0xff]  }
 0x23f   :  { %v890_v14 = vpack.c.bf16 %v792_v12, %v789_v9  ;;  %v4337_v9 = vld [vmem:[%s4964_s6 + $0x8] sm:$0xff]   ;;  %v4340_v12 = vld [vmem:[%s4964_s6 + $0x20] sm:$0xff]  }
 0x243   :  { %v3932_v15 = vpop.f32.mrb[48].mxu1 }
 0x244   :  { %v805_v17 = vpop.f32.mrb[49].mxu1 }
 0x245   :  { %v3933_v19 = vpop.f32.mrb[50].mxu1 }
 0x246   :  { %3991 = vmatmul.mubr.msk.bf16.vlgmr.msra.gmra.mrb[16].mxu0 %vm903_vm2, %v883_v45  ;;  %v893_v20 = vpack.c.bf16 %v3933_v19, %v3932_v15  ;;  %v808_v21 = vpop.f32.mrb[51].mxu1  ;;  %v3554_v45 = vld [vmem:[%s4963_s4 + $0x30] sm:$0xf]  ;;  %v4344_v19 = vld [vmem:[%s4966_s7 + $0x8] sm:$0xff]  }
 0x247   :  { %3996 = vmatprep.mubr.msk.bf16.mxu0 %vm903_vm2, %v884_v55  ;;  %3995 = vmatpush3.bf16.msra.mxu0 %v1414_v16  ;;  %v892_v22 = vpack.c.bf16 %v808_v21, %v805_v17  ;;  %v1670_v46 = vsel %vm910_vm1, %v3554_v45, 0  ;;  %v4342_v15 = vld [vmem:[%s4964_s6 + $0x30] sm:$0xff]   ;;  %v4343_v16 = vld [vmem:[%s4964_s6 + $0x38] sm:$0xff]  }
 0x248   :  { %4283 = vmatprep.subr.msk.bf16.mxu0 %vm910_vm1, %v3545_v18  ;;  %v4347_v17 = vld [vmem:[%s4966_s7 + $0x18] sm:$0xff]   ;;  %v4368_v18 = vmov 0.0  }
 0x24b   :  { %v3936_v13 = vpop.f32.mrb[52].mxu1 }
 0x24c   :  { %v821_v23 = vpop.f32.mrb[53].mxu1 }
 0x24d   :  { %v3937_v24 = vpop.f32.mrb[54].mxu1 }
 0x24e   :  { %v895_v25 = vpack.c.bf16 %v3937_v24, %v3936_v13  ;;  %v824_v26 = vpop.f32.mrb[55].mxu1 }
 0x24f   :  { %v894_v27 = vpack.c.bf16 %v824_v26, %v821_v23 }
 0x252   :  { %3997 = vmatmul.mubr.msk.bf16.vlgmr.msra.gmra.mrb[16].mxu0 %vm903_vm2, %v885_v53  ;;  %v4336_v53 = vld [vmem:[%s4964_s6] sm:$0xff]  }
 0x253   :  { %4002 = vmatprep.mubr.msk.bf16.mxu0 %vm903_vm2, %v886_v63  ;;  %4001 = vmatpush3.bf16.msra.mxu0 %v1478_v28  ;;  %v3940_v30 = vpop.f32.mrb[56].mxu1 }
 0x254   :  { %4284 = vmatprep.subr.msk.bf16.mxu0 %vm910_vm1, %v3548_v29  ;;  %v837_v31 = vpop.f32.mrb[57].mxu1  ;;  %4046 = vmatprep.mubr.msk.bf16.mxu1 %vm1998_vm3, %v4336_v53 }
 0x255   :  { %v3941_v32 = vpop.f32.mrb[58].mxu1 }
 0x256   :  { %v897_v33 = vpack.c.bf16 %v3941_v32, %v3940_v30  ;;  %v840_v34 = vpop.f32.mrb[59].mxu1 }
 0x257   :  { %v896_v35 = vpack.c.bf16 %v840_v34, %v837_v31 }
 0x25b   :  { %v3944_v36 = vpop.f32.mrb[60].mxu1 }
 0x25c   :  { %v853_v38 = vpop.f32.mrb[61].mxu1 }
 0x25d   :  { %v3945_v40 = vpop.f32.mrb[62].mxu1 }
 0x25e   :  { %4003 = vmatmul.mubr.msk.bf16.vlgmr.msra.gmra.mrb[16].mxu0 %vm903_vm2, %v887_v61  ;;  %v899_v41 = vpack.c.bf16 %v3945_v40, %v3944_v36  ;;  %v856_v42 = vpop.f32.mrb[63].mxu1 }
 0x25f   :  { %4008 = vmatprep.mubr.msk.bf16.mxu0 %vm903_vm2, %v888_v5  ;;  %4007 = vmatpush3.bf16.msra.mxu0 %v1542_v37  ;;  %v898_v43 = vpack.c.bf16 %v856_v42, %v853_v38  ;;  %v4351_v37 = vld [vmem:[%s4966_s7 + $0x38] sm:$0xff]  }
 0x260   :  { %4285 = vmatprep.subr.msk.bf16.mxu0 %vm910_vm1, %v3551_v39 }
 0x26a   :  { %4009 = vmatmul.mubr.msk.bf16.vlgmr.msra.gmra.mrb[16].mxu0 %vm903_vm2, %v889_v3 }
 0x26b   :  { %4014 = vmatprep.mubr.msk.bf16.mxu0 %vm903_vm2, %v890_v14  ;;  %4013 = vmatpush3.bf16.msra.mxu0 %v1606_v44  ;;  %v4341_v14 = vld [vmem:[%s4964_s6 + $0x28] sm:$0xff]  }
 0x26c   :  { %4286 = vmatprep.subr.msk.bf16.mxu0 %vm910_vm1, %v3554_v45  ;;  %v4348_v45 = vld [vmem:[%s4966_s7 + $0x20] sm:$0xff]  }
 0x276   :  { %4015 = vmatmul.mubr.msk.bf16.vlgmr.msra.gmra.mrb[16].mxu0 %vm903_vm2, %v891_v11  ;;  %v4339_v11 = vld [vmem:[%s4964_s6 + $0x18] sm:$0xff]  }
 0x277   :  { %4020 = vmatprep.mubr.msk.bf16.mxu0 %vm903_vm2, %v892_v22  ;;  %4019 = vmatpush3.bf16.msra.mxu0 %v1670_v46  ;;  %v4353_v46 = vld [vmem:[%s4966_s7 + $0x48] sm:$0xff]  }
 0x278   :  { %4287 = vmatprep.subr.msk.bf16.mxu0 %vm910_vm1, %v3557_v47 }
 0x282   :  { %4021 = vmatmul.mubr.msk.bf16.vlgmr.msra.gmra.mrb[16].mxu0 %vm903_vm2, %v893_v20 }
 0x283   :  { %4026 = vmatprep.mubr.msk.bf16.mxu0 %vm903_vm2, %v894_v27  ;;  %4025 = vmatpush3.bf16.msra.mxu0 %v1734_v48  ;;  %v4345_v27 = vld [vmem:[%s4966_s7] sm:$0xff]  }
 0x284   :  { %4288 = vmatprep.subr.msk.bf16.mxu0 %vm910_vm1, %v3560_v49 }
 0x28e   :  { %4027 = vmatmul.mubr.msk.bf16.vlgmr.msra.gmra.mrb[16].mxu0 %vm903_vm2, %v895_v25  ;;  %v4349_v25 = vld [vmem:[%s4966_s7 + $0x28] sm:$0xff]  }
 0x28f   :  { %4032 = vmatprep.mubr.msk.bf16.mxu0 %vm903_vm2, %v896_v35  ;;  %4031 = vmatpush3.bf16.msra.mxu0 %v1798_v50  ;;  %v4346_v35 = vld [vmem:[%s4966_s7 + $0x10] sm:$0xff]  }
 0x290   :  { %4289 = vmatprep.subr.msk.bf16.mxu0 %vm910_vm1, %v3563_v51 }
 0x29a   :  { %4033 = vmatmul.mubr.msk.bf16.vlgmr.msra.gmra.mrb[16].mxu0 %vm903_vm2, %v897_v33 }
 0x29b   :  { %4038 = vmatprep.mubr.msk.bf16.mxu0 %vm903_vm2, %v898_v43  ;;  %4037 = vmatpush3.bf16.msra.mxu0 %v1862_v52 }
 0x29c   :  { %4062 = vmatprep.subr.bf16.mxu0 %v4368_v18 }
 0x2a6   :  { %4039 = vmatmul.mubr.msk.bf16.vlgmr.msra.gmra.mrb[16].mxu0 %vm903_vm2, %v899_v41 }
 0x2a7   :  { %4063 = vmatpush3.bf16.msra.mxu0 %v4344_v19  ;;  %4064 = vmatprep.mubr.msk.bf16.mxu0 %vm4369_vm8, %v4368_v18 }
 0x2a8   :  { %4068 = vmatprep.subr.bf16.mxu0 %v4368_v18 }
 0x379   :  { %v4040_v55 = vpop.f32.mrb[16].mxu0 }
 0x37a   :  { %v1926_v56 = vadd.f32 %v4040_v55, %v3566_v54  ;;  %v1898_v57 = vpop.f32.mrb[17].mxu0  ;;  %v4355_v55 = vld [vmem:[%s4966_s7 + $0x58] sm:$0xff]  }
 0x37b   :  { %v1924_v58 = vadd.f32 %v3566_v54, %v1898_v57  ;;  %v4041_v59 = vpop.f32.mrb[18].mxu0  ;;  %v4352_v57 = vld [vmem:[%s4966_s7 + $0x40] sm:$0xff]  }
 0x37c   :  { %v1934_v60 = vmul.f32 0.2, %v1926_v56  ;;  %v1927_v61 = vadd.f32 %v4041_v59, %v3566_v54  ;;  %v1901_v62 = vpop.f32.mrb[19].mxu0  ;;  %vm1930_vm4 = vcmp.ge.f32.partialorder %v1926_v56, 0.0 }
 0x37d   :  { %v1932_v63 = vmul.f32 0.2, %v1924_v58  ;;  %v1925_v0 = vadd.f32 %v3566_v54, %v1901_v62  ;;  %vm1928_vm5 = vcmp.ge.f32.partialorder %v1924_v58, 0.0  ;;  %v4350_v54 = vld [vmem:[%s4966_s7 + $0x30] sm:$0xff]  }
 0x37e   :  { %vm1931_vm6 = vcmp.ge.f32.partialorder %v1927_v61, 0.0  ;;  %v1935_v1 = vmul.f32 0.2, %v1927_v61  ;;  %v1938_v3 = vsel %vm1930_vm4, %v1926_v56, %v1934_v60  ;;  %v4354_v60 = vld [vmem:[%s4966_s7 + $0x50] sm:$0xff]  }
 0x37f   :  { %vm1929_vm7 = vcmp.ge.f32.partialorder %v1925_v0, 0.0  ;;  %v1933_v2 = vmul.f32 0.2, %v1925_v0  ;;  %v1936_v5 = vsel %vm1928_vm5, %v1924_v58, %v1932_v63  ;;  %v4357_v58 = vld [vmem:[%s4966_s7 + $0x68] sm:$0xff]   ;;  %v4356_v63 = vld [vmem:[%s4966_s7 + $0x60] sm:$0xff]  }
 0x380   :  { %v1939_v4 = vsel %vm1931_vm6, %v1927_v61, %v1935_v1  ;;  %v4359_v61 = vld [vmem:[%s4966_s7 + $0x78] sm:$0xff]  }
 0x381   :  { %v1937_v6 = vsel %vm1929_vm7, %v1925_v0, %v1933_v2  ;;  %v1941_v7 = vpack.c.bf16 %v1939_v4, %v1938_v3  ;;  %v4358_v0 = vld [vmem:[%s4966_s7 + $0x70] sm:$0xff]  }
 0x382   :  { %v1940_v8 = vpack.c.bf16 %v1937_v6, %v1936_v5 }
 0x384   :  { %4042 = vmatprep.subr.bf16.mxu1 %v1940_v8 }
 0x385   :  { %4043 = vmatpush3.bf16.msra.mxu1 %v1940_v8 }
 0x386   :  { %4044 = vmatprep.subr.bf16.mxu1 %v1941_v7 }
 0x389   :  { %4045 = vmatpush3.bf16.msra.mxu1 %v1941_v7 }
 0x38a   :  { %4080 = vmatprep.subr.bf16.mxu1 %v4368_v18 }
 0x38c   :  { %4047 = vmatmul.mubr.msk.bf16.vlgmr.msra.gmra.mrb[64].mxu1 %vm1998_vm3, %v4337_v9 }
 0x38d   :  { %4050 = vmatprep.mubr.msk.bf16.mxu1 %vm1998_vm3, %v4338_v10  ;;  %4081 = vmatpush3.bf16.msra.mxu1 %v4347_v17 }
 0x38e   :  { %4092 = vmatprep.subr.bf16.mxu1 %v4368_v18 }
 0x394   :  { %4051 = vmatmul.mubr.msk.bf16.gmra.mrb[68].mxu1 %vm1998_vm3, %v4339_v11 }
 0x395   :  { %4054 = vmatprep.mubr.msk.bf16.mxu1 %vm1998_vm3, %v4340_v12 }
 0x39c   :  { %4055 = vmatmul.mubr.msk.bf16.gmra.mrb[72].mxu1 %vm1998_vm3, %v4341_v14 }
 0x39d   :  { %4058 = vmatprep.mubr.msk.bf16.mxu1 %vm1998_vm3, %v4342_v15 }
 0x3a4   :  { %4059 = vmatmul.mubr.msk.bf16.gmra.mrb[76].mxu1 %vm1998_vm3, %v4343_v16 }
 0x3a5   :  { %4082 = vmatprep.mubr.msk.bf16.mxu1 %vm4369_vm8, %v4368_v18 }
 0x45f   :  { %v4048_v20 = vpop.f32.mrb[64].mxu1 }
 0x460   :  { %v2057_v21 = vpop.f32.mrb[65].mxu1 }
 0x461   :  { %v4049_v22 = vpop.f32.mrb[66].mxu1 }
 0x462   :  { %v2121_v13 = vpack.c.bf16 %v4049_v22, %v4048_v20  ;;  %v2060_v23 = vpop.f32.mrb[67].mxu1 }
 0x463   :  { %v2120_v24 = vpack.c.bf16 %v2060_v23, %v2057_v21 }
 0x464   :  { %v2291_v26 = vrot.slane %v2121_v13, 4 }
 0x465   :  { %v2134_v28 = vrot.slane %v2120_v24, 4 }
 0x466   :  { %4083 = vmatmul.mubr.msk.bf16.vlgmr.msra.gmra.mrb[80].mxu1 %vm2141_vm9, %v2291_v26 }
 0x467   :  { %4065 = vmatmul.mubr.msk.bf16.vlgmr.msra.gmra.mrb[20].mxu0 %vm2141_vm9, %v2134_v28  ;;  %v4052_v29 = vpop.f32.mrb[68].mxu1  ;;  %4093 = vmatpush3.bf16.msra.mxu1 %v4349_v25 }
 0x468   :  { %4069 = vmatpush3.bf16.msra.mxu0 %v4345_v27  ;;  %4070 = vmatprep.mubr.msk.bf16.mxu0 %vm4369_vm8, %v4368_v18  ;;  %v2073_v30 = vpop.f32.mrb[69].mxu1 }
 0x469   :  { %4074 = vmatprep.subr.bf16.mxu0 %v4368_v18  ;;  %v4053_v31 = vpop.f32.mrb[70].mxu1  ;;  %4094 = vmatprep.mubr.msk.bf16.mxu1 %vm4369_vm8, %v4368_v18 }
 0x46a   :  { %v2123_v32 = vpack.c.bf16 %v4053_v31, %v4052_v29  ;;  %v2076_v33 = vpop.f32.mrb[71].mxu1  ;;  %4104 = vmatprep.subr.bf16.mxu1 %v4368_v18 }
 0x46b   :  { %v2122_v34 = vpack.c.bf16 %v2076_v33, %v2073_v30 }
 0x46c   :  { %v2507_v43 = vrot.slane %v2123_v32, 4 }
 0x46d   :  { %v2399_v36 = vrot.slane %v2122_v34, 4 }
 0x46f   :  { %4071 = vmatmul.mubr.msk.bf16.vlgmr.msra.gmra.mrb[24].mxu0 %vm2141_vm9, %v2120_v24  ;;  %4095 = vmatmul.mubr.msk.bf16.vlgmr.msra.gmra.mrb[84].mxu1 %vm2141_vm9, %v2399_v36  ;;  %v4056_v38 = vpop.f32.mrb[72].mxu1 }
 0x470   :  { %4075 = vmatpush3.bf16.msra.mxu0 %v4346_v35  ;;  %4076 = vmatprep.mubr.msk.bf16.mxu0 %vm4369_vm8, %v4368_v18  ;;  %v2089_v39 = vpop.f32.mrb[73].mxu1 }
 0x471   :  { %4086 = vmatprep.subr.bf16.mxu0 %v4368_v18  ;;  %4105 = vmatpush3.bf16.msra.mxu1 %v4351_v37  ;;  %v4057_v40 = vpop.f32.mrb[74].mxu1 }
 0x472   :  { %4106 = vmatprep.mubr.msk.bf16.mxu1 %vm4369_vm8, %v4368_v18  ;;  %v2125_v41 = vpack.c.bf16 %v4057_v40, %v4056_v38  ;;  %v2092_v42 = vpop.f32.mrb[75].mxu1  ;;  %4116 = vmatprep.subr.bf16.mxu1 %v4368_v18 }
 0x473   :  { %v2124_v44 = vpack.c.bf16 %v2092_v42, %v2089_v39 }
 0x474   :  { %v2723_v56 = vrot.slane %v2125_v41, 4 }
 0x475   :  { %v2615_v52 = vrot.slane %v2124_v44, 4 }
 0x477   :  { %4077 = vmatmul.mubr.msk.bf16.vlgmr.msra.gmra.mrb[28].mxu0 %vm2141_vm9, %v2121_v13  ;;  %4107 = vmatmul.mubr.msk.bf16.vlgmr.msra.gmra.mrb[88].mxu1 %vm2141_vm9, %v2507_v43  ;;  %v4060_v47 = vpop.f32.mrb[76].mxu1 }
 0x478   :  { %4087 = vmatpush3.bf16.msra.mxu0 %v4348_v45  ;;  %4088 = vmatprep.mubr.msk.bf16.mxu0 %vm4369_vm8, %v4368_v18  ;;  %v2105_v48 = vpop.f32.mrb[77].mxu1 }
 0x479   :  { %4098 = vmatprep.subr.bf16.mxu0 %v4368_v18  ;;  %4117 = vmatpush3.bf16.msra.mxu1 %v4353_v46  ;;  %v4061_v49 = vpop.f32.mrb[78].mxu1 }
 0x47a   :  { %4118 = vmatprep.mubr.msk.bf16.mxu1 %vm4369_vm8, %v4368_v18  ;;  %4128 = vmatprep.subr.bf16.mxu1 %v4368_v18  ;;  %v2127_v50 = vpack.c.bf16 %v4061_v49, %v4060_v47  ;;  %v2108_v51 = vpop.f32.mrb[79].mxu1 }
 0x47b   :  { %v2126_v53 = vpack.c.bf16 %v2108_v51, %v2105_v48 }
 0x47c   :  { %v2939_v62 = vrot.slane %v2127_v50, 4 }
 0x47d   :  { %v2831_v59 = vrot.slane %v2126_v53, 4 }
 0x47f   :  { %4089 = vmatmul.mubr.msk.bf16.vlgmr.msra.gmra.mrb[32].mxu0 %vm2141_vm9, %v2122_v34  ;;  %4119 = vmatmul.mubr.msk.bf16.vlgmr.msra.gmra.mrb[92].mxu1 %vm2141_vm9, %v2615_v52 }
 0x480   :  { %4099 = vmatpush3.bf16.msra.mxu0 %v4350_v54  ;;  %4100 = vmatprep.mubr.msk.bf16.mxu0 %vm4369_vm8, %v4368_v18 }
 0x481   :  { %4110 = vmatprep.subr.bf16.mxu0 %v4368_v18  ;;  %4129 = vmatpush3.bf16.msra.mxu1 %v4355_v55 }
 0x482   :  { %4130 = vmatprep.mubr.msk.bf16.mxu1 %vm4369_vm8, %v4368_v18  ;;  %4140 = vmatprep.subr.bf16.mxu1 %v4368_v18 }
 0x487   :  { %4101 = vmatmul.mubr.msk.bf16.vlgmr.msra.gmra.mrb[36].mxu0 %vm2141_vm9, %v2123_v32  ;;  %4131 = vmatmul.mubr.msk.bf16.vlgmr.msra.gmra.mrb[96].mxu1 %vm2141_vm9, %v2723_v56 }
 0x488   :  { %4111 = vmatpush3.bf16.msra.mxu0 %v4352_v57  ;;  %4112 = vmatprep.mubr.msk.bf16.mxu0 %vm4369_vm8, %v4368_v18 }
 0x489   :  { %4122 = vmatprep.subr.bf16.mxu0 %v4368_v18  ;;  %4141 = vmatpush3.bf16.msra.mxu1 %v4357_v58 }
 0x48a   :  { %4142 = vmatprep.mubr.msk.bf16.mxu1 %vm4369_vm8, %v4368_v18  ;;  %4152 = vmatprep.subr.bf16.mxu1 %v4368_v18 }
 0x48f   :  { %4113 = vmatmul.mubr.msk.bf16.vlgmr.msra.gmra.mrb[40].mxu0 %vm2141_vm9, %v2124_v44  ;;  %4143 = vmatmul.mubr.msk.bf16.vlgmr.msra.gmra.mrb[100].mxu1 %vm2141_vm9, %v2831_v59 }
 0x490   :  { %4123 = vmatpush3.bf16.msra.mxu0 %v4354_v60  ;;  %4124 = vmatprep.mubr.msk.bf16.mxu0 %vm4369_vm8, %v4368_v18 }
 0x491   :  { %4134 = vmatprep.subr.bf16.mxu0 %v4368_v18  ;;  %4153 = vmatpush3.bf16.msra.mxu1 %v4359_v61 }
 0x492   :  { %4154 = vmatprep.mubr.msk.bf16.mxu1 %vm4369_vm8, %v4368_v18  ;;  %4164 = vmatprep.subr.bf16.mxu1 %v4368_v18 }
 0x497   :  { %4125 = vmatmul.mubr.msk.bf16.vlgmr.msra.gmra.mrb[44].mxu0 %vm2141_vm9, %v2125_v41  ;;  %4155 = vmatmul.mubr.msk.bf16.vlgmr.msra.gmra.mrb[104].mxu1 %vm2141_vm9, %v2939_v62 }
 0x498   :  { %4135 = vmatpush3.bf16.msra.mxu0 %v4356_v63  ;;  %4136 = vmatprep.mubr.msk.bf16.mxu0 %vm4369_vm8, %v4368_v18 }
 0x499   :  { %4146 = vmatprep.subr.bf16.mxu0 %v4368_v18  ;;  %4166 = vmatprep.mubr.msk.bf16.mxu1 %vm4369_vm8, %v4368_v18 }
 0x49f   :  { %4137 = vmatmul.mubr.msk.bf16.vlgmr.msra.gmra.mrb[48].mxu0 %vm2141_vm9, %v2126_v53 }
 0x4a0   :  { %4147 = vmatpush3.bf16.msra.mxu0 %v4358_v0  ;;  %4148 = vmatprep.mubr.msk.bf16.mxu0 %vm4369_vm8, %v4368_v18 }
 0x4a1   :  { %4158 = vmatprep.subr.bf16.mxu0 %v4368_v18 }
 0x4a7   :  { %4149 = vmatmul.mubr.msk.bf16.vlgmr.msra.gmra.mrb[52].mxu0 %vm2141_vm9, %v2127_v50 }
 0x4a8   :  { %4160 = vmatprep.mubr.msk.bf16.mxu0 %vm4369_vm8, %v4368_v18 }
 0x539   :  { %v2335_v1 = vpop.f32.mrb[80].mxu1 }
 0x53a   :  { %v2179_v2 = vpop.f32.mrb[20].mxu0  ;;  %v4084_v3 = vpop.f32.mrb[81].mxu1 }
 0x53b   :  { %v4066_v4 = vpop.f32.mrb[21].mxu0  ;;  %v2338_v5 = vpop.f32.mrb[82].mxu1 }
 0x53c   :  { %v2182_v6 = vpop.f32.mrb[22].mxu0  ;;  %v4085_v7 = vpop.f32.mrb[83].mxu1 }
 0x53d   :  { %v4067_v8 = vpop.f32.mrb[23].mxu0 }
 0x542   :  { %v2228_v9 = vpop.f32.mrb[24].mxu0  ;;  %v2443_v10 = vpop.f32.mrb[84].mxu1 }
 0x543   :  { %v2229_v11 = vadd.f32 %v2228_v9, %v2179_v2  ;;  %v4072_v12 = vpop.f32.mrb[25].mxu0  ;;  %v4096_v14 = vpop.f32.mrb[85].mxu1 }
 0x544   :  { %v2231_v15 = vpop.f32.mrb[26].mxu0  ;;  %v2446_v16 = vpop.f32.mrb[86].mxu1 }
 0x545   :  { %v4073_v17 = vpop.f32.mrb[27].mxu0  ;;  %v4097_v19 = vpop.f32.mrb[87].mxu1  ;;  %v3645_v15 = vld [vmem:[%s4968_s8] ss:$0 sm:$0xff] }
 0x54a   :  { %v2280_v20 = vpop.f32.mrb[28].mxu0  ;;  %v2551_v21 = vpop.f32.mrb[88].mxu1 }
 0x54b   :  { %v2286_v22 = vadd.f32 %v2280_v20, %v2229_v11  ;;  %v4078_v13 = vpop.f32.mrb[29].mxu0  ;;  %v4108_v23 = vpop.f32.mrb[89].mxu1 }
 0x54c   :  { %v2283_v24 = vpop.f32.mrb[30].mxu0  ;;  %v2554_v25 = vpop.f32.mrb[90].mxu1 }
 0x54d   :  { %v2341_v26 = vadd.f32 %v2335_v1, %v2286_v22  ;;  %v4079_v27 = vpop.f32.mrb[31].mxu0  ;;  %v4109_v28 = vpop.f32.mrb[91].mxu1  ;;  %v3647_v24 = vld [vmem:[%s4969_s9 + $0x1] sm:$0x1]  ;;  %v3002_v25 = vld [vmem:[%s4969_s9] sm:$0x1] }
 0x54e   :  { %v4361_v27 = vld [vmem:[%s4967_s10 + $0x18] sm:$0xff]   ;;  %v4362_v28 = vld [vmem:[%s4967_s10] sm:$0xff]  }
 0x552   :  { %v2388_v29 = vpop.f32.mrb[32].mxu0  ;;  %v2659_v30 = vpop.f32.mrb[92].mxu1 }
 0x553   :  { %v2394_v31 = vadd.f32 %v2388_v29, %v2341_v26  ;;  %v4090_v32 = vpop.f32.mrb[33].mxu0  ;;  %v4120_v33 = vpop.f32.mrb[93].mxu1  ;;  %v4360_v26 = vld [vmem:[%s4967_s10 + $0x10] sm:$0xff]   ;;  %v4363_v29 = vld [vmem:[%s4967_s10 + $0x8] sm:$0xff]  }
 0x554   :  { %v2391_v34 = vpop.f32.mrb[34].mxu0  ;;  %v2662_v35 = vpop.f32.mrb[94].mxu1 }
 0x555   :  { %v2449_v36 = vadd.f32 %v2443_v10, %v2394_v31  ;;  %v4091_v37 = vpop.f32.mrb[35].mxu0  ;;  %v4121_v38 = vpop.f32.mrb[95].mxu1 }
 0x55a   :  { %v2496_v39 = vpop.f32.mrb[36].mxu0  ;;  %v2767_v40 = vpop.f32.mrb[96].mxu1 }
 0x55b   :  { %v2502_v41 = vadd.f32 %v2496_v39, %v2449_v36  ;;  %v4102_v42 = vpop.f32.mrb[37].mxu0  ;;  %v4132_v43 = vpop.f32.mrb[97].mxu1 }
 0x55c   :  { %v2499_v44 = vpop.f32.mrb[38].mxu0  ;;  %v2770_v45 = vpop.f32.mrb[98].mxu1  ;;  %v4364_v42 = vld [vmem:[%s4967_s10 + $0x20] sm:$0xff]   ;;  %v4365_v43 = vld [vmem:[%s4967_s10 + $0x28] sm:$0xff]  }
 0x55d   :  { %v2557_v46 = vadd.f32 %v2551_v21, %v2502_v41  ;;  %v4103_v47 = vpop.f32.mrb[39].mxu0  ;;  %v4133_v48 = vpop.f32.mrb[99].mxu1  ;;  %v3668_v41 = vld [vmem:[%s4969_s9 + $0x3] sm:$0x1] }
 0x562   :  { %v2604_v49 = vpop.f32.mrb[40].mxu0  ;;  %v2875_v50 = vpop.f32.mrb[100].mxu1 }
 0x563   :  { %v2610_v51 = vadd.f32 %v2604_v49, %v2557_v46  ;;  %v4114_v52 = vpop.f32.mrb[41].mxu0  ;;  %v4144_v53 = vpop.f32.mrb[101].mxu1 }
 0x564   :  { %v2607_v54 = vpop.f32.mrb[42].mxu0  ;;  %v2878_v55 = vpop.f32.mrb[102].mxu1 }
 0x565   :  { %v2665_v56 = vadd.f32 %v2659_v30, %v2610_v51  ;;  %v4115_v57 = vpop.f32.mrb[43].mxu0  ;;  %v4145_v58 = vpop.f32.mrb[103].mxu1  ;;  %v4366_v54 = vld [vmem:[%s4967_s10 + $0x30] sm:$0xff]  }
 0x56a   :  { %v2712_v59 = vpop.f32.mrb[44].mxu0  ;;  %v2983_v60 = vpop.f32.mrb[104].mxu1 }
 0x56b   :  { %v2718_v61 = vadd.f32 %v2712_v59, %v2665_v56  ;;  %v4126_v62 = vpop.f32.mrb[45].mxu0  ;;  %v4156_v63 = vpop.f32.mrb[105].mxu1  ;;  %v4367_v59 = vld [vmem:[%s4967_s10 + $0x38] sm:$0xff]  }
 0x56c   :  { %v2715_v0 = vpop.f32.mrb[46].mxu0  ;;  %v2986_v1 = vpop.f32.mrb[106].mxu1 }
 0x56d   :  { %v2773_v2 = vadd.f32 %v2767_v40, %v2718_v61  ;;  %v4127_v3 = vpop.f32.mrb[47].mxu0  ;;  %v4157_v4 = vpop.f32.mrb[107].mxu1  ;;  %v3659_v40 = vld [vmem:[%s4969_s9 + $0x2] sm:$0x1]  ;;  %v19_v1 = vstv %s4970_s13 }
 0x56e   :  { %20 = vst [vmem:[#allocation2] sm:$0x1] %v19_v1 }
 0x572   :  { %v2820_v5 = vpop.f32.mrb[48].mxu0 }
 0x573   :  { %v2826_v6 = vadd.f32 %v2820_v5, %v2773_v2  ;;  %v4138_v7 = vpop.f32.mrb[49].mxu0 }
 0x574   :  { %v2823_v8 = vpop.f32.mrb[50].mxu0 }
 0x575   :  { %v2881_v9 = vadd.f32 %v2875_v50, %v2826_v6  ;;  %v4139_v10 = vpop.f32.mrb[51].mxu0 }
 0x57a   :  { %v2928_v11 = vpop.f32.mrb[52].mxu0 }
 0x57b   :  { %v2934_v12 = vadd.f32 %v2928_v11, %v2881_v9  ;;  %v4150_v14 = vpop.f32.mrb[53].mxu0 }
 0x57c   :  { %v2931_v16 = vpop.f32.mrb[54].mxu0 }
 0x57d   :  { %v2989_v17 = vadd.f32 %v2983_v60, %v2934_v12  ;;  %v4151_v19 = vpop.f32.mrb[55].mxu0 }
 0x57f   :  { %v2997_v20 = vadd.f32 %v3645_v15, %v2989_v17  ;;  %v3678_v15 = vld [vmem:[%s4972_s12] ss:$0 sm:$0xff] }
 0x581   :  { %vm2998_vm10 = vcmp.ge.f32.partialorder %v2997_v20, 0.0  ;;  %v2999_v21 = vmul.f32 0.2, %v2997_v20 }
 0x583   :  { %v3000_v22 = vsel %vm2998_vm10, %v2997_v20, %v2999_v21  ;;  %v3679_v20 = vld [vmem:[#allocation2] ss:$0 sm:$0xff] }
 0x584   :  { %v3001_v13 = vpack.c.bf16 %v3000_v22, %v3000_v22 }
 0x586   :  { %v3007_v23 = vsel %vm910_vm1, %v3001_v13, 0 }
 0x587   :  { %4165 = vmatpush3.bf16.msra.mxu1 %v3007_v23  ;;  %4159 = vmatpush3.bf16.msra.mxu0 %v3007_v23 }
 0x588   :  { %4170 = vmatprep.subr.bf16.mxu0 %v4368_v18  ;;  %4178 = vmatprep.subr.bf16.mxu1 %v4368_v18 }
 0x58a   :  { %4167 = vmatmul.mubr.msk.bf16.vlgmr.msra.gmra.mrb[108].mxu1 %vm903_vm2, %v3647_v24  ;;  %4161 = vmatmul.mubr.msk.bf16.vlgmr.msra.gmra.mrb[56].mxu0 %vm903_vm2, %v3002_v25 }
 0x58b   :  { %4171 = vmatpush3.bf16.msra.mxu0 %v4360_v26  ;;  %4174 = vmatprep.mubr.msk.bf16.mxu0 %vm4369_vm8, %v4368_v18 }
 0x58c   :  { %4172 = vmatprep.subr.bf16.mxu0 %v4368_v18  ;;  %4182 = vmatprep.mubr.msk.bf16.mxu1 %vm4369_vm8, %v4368_v18 }
 0x58d   :  { %4179 = vmatpush3.bf16.msra.mxu1 %v4362_v28 }
 0x58e   :  { %4180 = vmatprep.subr.bf16.mxu1 %v4368_v18 }
 0x58f   :  { %4173 = vmatpush3.bf16.msra.mxu0 %v4361_v27 }
 0x590   :  { %4186 = vmatprep.subr.bf16.mxu0 %v4368_v18 }
 0x591   :  { %4181 = vmatpush3.bf16.msra.mxu1 %v4363_v29 }
 0x592   :  { %4192 = vmatprep.subr.bf16.mxu1 %v4368_v18 }
 0x65d   :  { %v3093_v30 = vpop.f32.mrb[108].mxu1  ;;  %v3043_v31 = vpop.f32.mrb[56].mxu0 }
 0x65e   :  { %v3099_v32 = vpack.c.bf16 %v3093_v30, %v3093_v30  ;;  %v4168_v33 = vpop.f32.mrb[109].mxu1  ;;  %v3049_v34 = vpack.c.bf16 %v3043_v31, %v3043_v31  ;;  %v4162_v35 = vpop.f32.mrb[57].mxu0 }
 0x65f   :  { %v3096_v36 = vpop.f32.mrb[110].mxu1  ;;  %v3046_v37 = vpop.f32.mrb[58].mxu0 }
 0x660   :  { %4175 = vmatmul.mubr.msk.bf16.vlgmr.msra.gmra.mrb[60].mxu0 %vm1998_vm3, %v3099_v32  ;;  %v4169_v38 = vpop.f32.mrb[111].mxu1  ;;  %4183 = vmatmul.mubr.msk.bf16.vlgmr.msra.gmra.mrb[112].mxu1 %vm1998_vm3, %v3049_v34  ;;  %v4163_v39 = vpop.f32.mrb[59].mxu0 }
 0x661   :  { %4187 = vmatpush3.bf16.msra.mxu0 %v3007_v23  ;;  %4188 = vmatprep.mubr.msk.bf16.mxu0 %vm4369_vm8, %v4368_v18 }
 0x662   :  { %4200 = vmatprep.subr.bf16.mxu0 %v4368_v18  ;;  %4196 = vmatprep.mubr.msk.bf16.mxu1 %vm4369_vm8, %v4368_v18 }
 0x663   :  { %4193 = vmatpush3.bf16.msra.mxu1 %v4364_v42 }
 0x664   :  { %4194 = vmatprep.subr.bf16.mxu1 %v4368_v18 }
 0x667   :  { %4195 = vmatpush3.bf16.msra.mxu1 %v4365_v43 }
 0x668   :  { %4189 = vmatmul.mubr.msk.bf16.vlgmr.msra.gmra.mrb[64].mxu0 %vm903_vm2, %v3659_v40  ;;  %4206 = vmatprep.subr.bf16.mxu1 %v4368_v18 }
 0x669   :  { %4201 = vmatpush3.bf16.msra.mxu0 %v3007_v23  ;;  %4202 = vmatprep.mubr.msk.bf16.mxu0 %vm4369_vm8, %v4368_v18 }
 0x670   :  { %4203 = vmatmul.mubr.msk.bf16.vlgmr.msra.gmra.mrb[68].mxu0 %vm903_vm2, %v3668_v41 }
 0x733   :  { %v3154_v44 = vpop.f32.mrb[60].mxu0  ;;  %v3209_v45 = vpop.f32.mrb[112].mxu1 }
 0x734   :  { %v4176_v46 = vpop.f32.mrb[61].mxu0  ;;  %v3210_v47 = vadd.f32 %v3209_v45, %v3154_v44  ;;  %v4184_v48 = vpop.f32.mrb[113].mxu1 }
 0x735   :  { %v3157_v49 = vpop.f32.mrb[62].mxu0  ;;  %v3212_v50 = vpop.f32.mrb[114].mxu1 }
 0x736   :  { %v4177_v51 = vpop.f32.mrb[63].mxu0  ;;  %v4185_v52 = vpop.f32.mrb[115].mxu1 }
 0x73b   :  { %v3254_v53 = vpop.f32.mrb[64].mxu0 }
 0x73c   :  { %v3260_v55 = vpack.c.bf16 %v3254_v53, %v3254_v53  ;;  %v4190_v56 = vpop.f32.mrb[65].mxu0 }
 0x73d   :  { %v3257_v57 = vpop.f32.mrb[66].mxu0 }
 0x73e   :  { %4197 = vmatmul.mubr.msk.bf16.vlgmr.msra.gmra.mrb[116].mxu1 %vm1998_vm3, %v3260_v55  ;;  %v4191_v58 = vpop.f32.mrb[67].mxu0 }
 0x73f   :  { %4207 = vmatpush3.bf16.msra.mxu1 %v4366_v54  ;;  %4210 = vmatprep.mubr.msk.bf16.mxu1 %vm4369_vm8, %v4368_v18 }
 0x740   :  { %4208 = vmatprep.subr.bf16.mxu1 %v4368_v18  ;;  %v3677_v18 = vld [vmem:[%s4971_s11] ss:$0 sm:$0xff] }
 0x743   :  { %v3361_v60 = vpop.f32.mrb[68].mxu0  ;;  %4209 = vmatpush3.bf16.msra.mxu1 %v4367_v59 }
 0x744   :  { %v3367_v61 = vpack.c.bf16 %v3361_v60, %v3361_v60  ;;  %v4204_v62 = vpop.f32.mrb[69].mxu0 }
 0x745   :  { %v3364_v63 = vpop.f32.mrb[70].mxu0 }
 0x746   :  { %4211 = vmatmul.mubr.msk.bf16.vlgmr.msra.gmra.mrb[120].mxu1 %vm1998_vm3, %v3367_v61  ;;  %v4205_v0 = vpop.f32.mrb[71].mxu0 }
 0x811   :  { %v3315_v2 = vpop.f32.mrb[116].mxu1 }
 0x812   :  { %v3321_v3 = vadd.f32 %v3315_v2, %v3210_v47  ;;  %v4198_v4 = vpop.f32.mrb[117].mxu1 }
 0x813   :  { %v3318_v5 = vpop.f32.mrb[118].mxu1 }
 0x814   :  { %v4199_v6 = vpop.f32.mrb[119].mxu1 }
 0x819   :  { %v3422_v7 = vpop.f32.mrb[120].mxu1 }
 0x81a   :  { %v3428_v8 = vadd.f32 %v3422_v7, %v3321_v3  ;;  %v4212_v9 = vpop.f32.mrb[121].mxu1 }
 0x81b   :  { %v3425_v10 = vpop.f32.mrb[122].mxu1 }
 0x81c   :  { %v3436_v11 = vadd.f32 %v3677_v18, %v3428_v8  ;;  %v4213_v12 = vpop.f32.mrb[123].mxu1 }
 0x81e   :  { %v3438_v14 = vmul.f32 0.2, %v3436_v11  ;;  %vm3437_vm11 = vcmp.ge.f32.partialorder %v3436_v11, 0.0 }
 0x820   :  { %v3439_v16 = vsel %vm3437_vm11, %v3436_v11, %v3438_v14 }
 0x821   :  { %v3447_v17 = vmul.f32 %v3678_v15, %v3439_v16 }
 0x823   :  { %v3449_v19 = vsel %vm3448_vm12, %v3447_v17, 0.0 }
 0x824   :  { %3450 = vadd.xlane.f32.xlu0 %v3449_v19 }
 0x8b1   :  { %v3451_v21 = vpop.xlane.xlu0 %3450 }
 0x8b2   :  { %v3459_v22 = vadd.f32 %v3679_v20, %v3451_v21 }
 0x8b4   :  { %3461 = vst.msk [vmem:[%s4973_s14] sm:$0x3] %vm3460_vm13, %v3459_v22 }

</bundles_post_ra>
